<compile_context>
chip_gen: v6e
topology: v6e:2x2x1
jax: 0.10.0
libtpu: 0.0.40
codegen_flags: <defaults>
</compile_context>

<pallas_src>
import functools
import math

import jax
import jax.numpy as jnp
from jax import lax
from jax.experimental import pallas as pl
from jax.experimental.pallas import tpu as pltpu


# ----------------------------- in-kernel helpers --------------------------- #

def _bmm(lhs, rhs, lhs_contract, rhs_contract):
    # Batched matmul: both operands carry a leading batch dim 0.
    return lax.dot_general(
        lhs, rhs,
        dimension_numbers=(((lhs_contract,), (rhs_contract,)), ((0,), (0,))),
        preferred_element_type=jnp.float32)


def _mm_t(x, w):
    # x: (M, K); w in PyTorch (out, in) layout: (Nout, K)  ->  x @ w.T
    return lax.dot_general(x, w, (((1,), (1,)), ((), ())),
                           preferred_element_type=jnp.float32)


def _layernorm(x, w, b, eps=1e-5):
    mu = jnp.mean(x, axis=-1, keepdims=True)
    var = jnp.mean((x - mu) ** 2, axis=-1, keepdims=True)
    return (x - mu) * lax.rsqrt(var + eps) * w + b


# --------------------------------- kernel ---------------------------------- #

def fused_transformer_kernel(
        x_ref, pe_ref,
        wq_ref, bq_ref, wk_ref, bk_ref, wv_ref, bv_ref, wo_ref, bo_ref,
        ln1w_ref, ln1b_ref, w1_ref, b1_ref, w2_ref, b2_ref, ln2w_ref, ln2b_ref,
        decw_ref, decb_ref,
        o_ref, x_state,
        *, nhead):
    bn, seq, E = x_ref.shape
    H = nhead
    hd = E // H
    M = bn * seq
    scale = 1.0 / math.sqrt(hd)
    layer = pl.program_id(1)
    bf16 = jnp.bfloat16

    # ---- layer 0: positional encoding add, state init -----------------------
    @pl.when(layer == 0)
    def _init():
        # TODO(synk): nn.Dropout(p=0.1) in PositionalEncoding and the encoder
        # layers is an identity here (eval-mode semantics).
        x_state[...] = (x_ref[...] + pe_ref[...][None, :, :]).reshape(M, E)

    x2d = x_state[...]                                         # (M, E) f32

    # ---- multi-head self-attention: all heads fused into one batch dim ------
    xb = jnp.broadcast_to(x2d.astype(bf16)[None], (H, M, E))    # (H, M, E)
    q = _bmm(xb, wq_ref[0], 2, 2) + bq_ref[0]                   # (H, M, hd)
    k = _bmm(xb, wk_ref[0], 2, 2) + bk_ref[0]
    v = _bmm(xb, wv_ref[0], 2, 2) + bv_ref[0]
    q = q * scale

    s = _bmm(q.astype(bf16), k.astype(bf16), 2, 2)              # (H, M, M) f32
    if bn > 1:
        # Block-diagonal mask: no attention across examples inside a batch tile.
        qi = lax.broadcasted_iota(jnp.int32, (M, M), 0) // seq
        ki = lax.broadcasted_iota(jnp.int32, (M, M), 1) // seq
        s = jnp.where((qi == ki)[None, :, :], s, -1e30)
    s = s - jnp.max(s, axis=-1, keepdims=True)
    p = jnp.exp(s)
    p = p * pl.reciprocal(jnp.sum(p, axis=-1, keepdims=True), approx=True)

    a = _bmm(p.astype(bf16), v.astype(bf16), 2, 1)              # (H, M, hd)
    attn = jnp.sum(_bmm(a.astype(bf16), wo_ref[0], 2, 1), axis=0) + bo_ref[0]

    # ---- residual + LayerNorm 1 ---------------------------------------------
    y = _layernorm(x2d + attn, ln1w_ref[0], ln1b_ref[0])

    # ---- feed-forward: Linear -> ReLU -> Linear ------------------------------
    h1 = jnp.maximum(_mm_t(y.astype(bf16), w1_ref[0]) + b1_ref[0], 0.0)
    ff = _mm_t(h1.astype(bf16), w2_ref[0]) + b2_ref[0]

    # ---- residual + LayerNorm 2 ---------------------------------------------
    z = _layernorm(y + ff, ln2w_ref[0], ln2b_ref[0])
    x_state[...] = z

    # ---- final Linear(E -> 1) decoder, fused into the last layer step --------
    @pl.when(layer == pl.num_programs(1) - 1)
    def _decode():
        dec = jnp.sum(z * decw_ref[...], axis=-1, keepdims=True) + decb_ref[...]
        o_ref[...] = dec.reshape(bn, seq, 1)


# ----------------------------- params / packing ---------------------------- #

def make_params(key, ninp, nhead, nhid, nlayers, max_len=512):
    # Sinusoidal positional-encoding buffer (PositionalEncoding recipe, ninp even).
    position = jnp.arange(max_len, dtype=jnp.float32)[:, None]
    div_term = jnp.exp(jnp.arange(0, ninp, 2, dtype=jnp.float32)
                       * (-math.log(10000.0) / ninp))
    ang = position * div_term[None, :]
    pe = jnp.stack([jnp.sin(ang), jnp.cos(ang)], axis=-1).reshape(max_len, ninp)

    def dense(k, shape, scale=0.02):
        return scale * jax.random.normal(k, shape, jnp.float32)

    layers = []
    for i in range(nlayers):
        ks = jax.random.split(jax.random.fold_in(key, i), 4)
        layers.append(dict(
            in_proj_w=dense(ks[0], (3 * ninp, ninp)),     # [Wq; Wk; Wv]
            in_proj_b=jnp.zeros((3 * ninp,), jnp.float32),
            out_proj_w=dense(ks[1], (ninp, ninp)),
            out_proj_b=jnp.zeros((ninp,), jnp.float32),
            ln1_w=jnp.ones((ninp,), jnp.float32),
            ln1_b=jnp.zeros((ninp,), jnp.float32),
            lin1_w=dense(ks[2], (nhid, ninp)),
            lin1_b=jnp.zeros((nhid,), jnp.float32),
            lin2_w=dense(ks[3], (ninp, nhid)),
            lin2_b=jnp.zeros((ninp,), jnp.float32),
            ln2_w=jnp.ones((ninp,), jnp.float32),
            ln2_b=jnp.zeros((ninp,), jnp.float32),
        ))
    dk = jax.random.fold_in(key, 1000)
    dec_w = dense(dk, (1, ninp))
    dec_b = jnp.zeros((1,), jnp.float32)
    return dict(pe=pe, layers=layers, dec_w=dec_w, dec_b=dec_b)


def pack_params(params, nhead):
    """Stack per-layer PyTorch-layout weights into kernel-friendly layouts."""
    layers = params['layers']
    E = layers[0]['out_proj_w'].shape[0]
    nhid = layers[0]['lin1_w'].shape[0]
    H = nhead
    hd = E // H
    bf16 = jnp.bfloat16

    def stack(fn, dtype=jnp.float32):
        return jnp.stack([fn(lp) for lp in layers], axis=0).astype(dtype)

    return dict(
        pe=params['pe'].astype(jnp.float32),
        wq=stack(lambda lp: lp['in_proj_w'][0:E].reshape(H, hd, E), bf16),
        wk=stack(lambda lp: lp['in_proj_w'][E:2 * E].reshape(H, hd, E), bf16),
        wv=stack(lambda lp: lp['in_proj_w'][2 * E:3 * E].reshape(H, hd, E), bf16),
        bq=stack(lambda lp: lp['in_proj_b'][0:E].reshape(H, 1, hd)),
        bk=stack(lambda lp: lp['in_proj_b'][E:2 * E].reshape(H, 1, hd)),
        bv=stack(lambda lp: lp['in_proj_b'][2 * E:3 * E].reshape(H, 1, hd)),
        # Wo^T grouped per head: woh[h, d, e] = Wo[e, h*hd + d]
        wo=stack(lambda lp: lp['out_proj_w'].T.reshape(H, hd, E), bf16),
        bo=stack(lambda lp: lp['out_proj_b'].reshape(1, E)),
        ln1w=stack(lambda lp: lp['ln1_w'].reshape(1, E)),
        ln1b=stack(lambda lp: lp['ln1_b'].reshape(1, E)),
        w1=stack(lambda lp: lp['lin1_w'], bf16),             # (L, nhid, E)
        b1=stack(lambda lp: lp['lin1_b'].reshape(1, nhid)),
        w2=stack(lambda lp: lp['lin2_w'], bf16),             # (L, E, nhid)
        b2=stack(lambda lp: lp['lin2_b'].reshape(1, E)),
        ln2w=stack(lambda lp: lp['ln2_w'].reshape(1, E)),
        ln2b=stack(lambda lp: lp['ln2_b'].reshape(1, E)),
        dec_w=params['dec_w'].astype(jnp.float32),            # (1, E)
        dec_b=params['dec_b'].reshape(1, 1).astype(jnp.float32),
    )


# --------------------------------- wrapper --------------------------------- #

def transformer_forward(src, packed, nhead, batch_tile=1):
    # src: (S, N, E) -> returns (S, N, 1), matching the PyTorch module.
    S, N, E = src.shape
    bn = batch_tile
    assert N % bn == 0 and E % nhead == 0
    H = nhead
    hd = E // H
    L = packed['wq'].shape[0]
    nhid = packed['w1'].shape[1]

    x = jnp.transpose(src, (1, 0, 2)).astype(jnp.float32)     # (N, S, E)
    pe = packed['pe'][:S]                                      # (S, E)

    def lsel(*trail):
        return lambda b, l: (l,) + trail

    def fixed(*idx):
        return lambda b, l: idx

    in_specs = [
        pl.BlockSpec((bn, S, E), lambda b, l: (b, 0, 0)),       # x
        pl.BlockSpec((S, E), fixed(0, 0)),                       # pe
        pl.BlockSpec((1, H, hd, E), lsel(0, 0, 0)),              # wq
        pl.BlockSpec((1, H, 1, hd), lsel(0, 0, 0)),              # bq
        pl.BlockSpec((1, H, hd, E), lsel(0, 0, 0)),              # wk
        pl.BlockSpec((1, H, 1, hd), lsel(0, 0, 0)),              # bk
        pl.BlockSpec((1, H, hd, E), lsel(0, 0, 0)),              # wv
        pl.BlockSpec((1, H, 1, hd), lsel(0, 0, 0)),              # bv
        pl.BlockSpec((1, H, hd, E), lsel(0, 0, 0)),              # wo
        pl.BlockSpec((1, 1, E), lsel(0, 0)),                     # bo
        pl.BlockSpec((1, 1, E), lsel(0, 0)),                     # ln1w
        pl.BlockSpec((1, 1, E), lsel(0, 0)),                     # ln1b
        pl.BlockSpec((1, nhid, E), lsel(0, 0)),                  # w1
        pl.BlockSpec((1, 1, nhid), lsel(0, 0)),                  # b1
        pl.BlockSpec((1, E, nhid), lsel(0, 0)),                  # w2
        pl.BlockSpec((1, 1, E), lsel(0, 0)),                     # b2
        pl.BlockSpec((1, 1, E), lsel(0, 0)),                     # ln2w
        pl.BlockSpec((1, 1, E), lsel(0, 0)),                     # ln2b
        pl.BlockSpec((1, E), fixed(0, 0)),                       # dec_w
        pl.BlockSpec((1, 1), fixed(0, 0)),                       # dec_b
    ]

    kernel = functools.partial(fused_transformer_kernel, nhead=nhead)
    out = pl.pallas_call(
        kernel,
        out_shape=jax.ShapeDtypeStruct((N, S, 1), jnp.float32),
        grid_spec=pltpu.PrefetchScalarGridSpec(
            num_scalar_prefetch=0,
            grid=(N // bn, L),                                   # batch x layers
            in_specs=in_specs,
            out_specs=pl.BlockSpec((bn, S, 1), lambda b, l: (b, 0, 0)),
            scratch_shapes=[pltpu.VMEM((bn * S, E), jnp.float32)],
        ),
        compiler_params=pltpu.CompilerParams(
            dimension_semantics=("parallel", "arbitrary"),
            vmem_limit_bytes=48 * 1024 * 1024,
        ),
    )(x, pe,
      packed['wq'], packed['bq'], packed['wk'], packed['bk'],
      packed['wv'], packed['bv'], packed['wo'], packed['bo'],
      packed['ln1w'], packed['ln1b'], packed['w1'], packed['b1'],
      packed['w2'], packed['b2'], packed['ln2w'], packed['ln2b'],
      packed['dec_w'], packed['dec_b'])

    return jnp.transpose(out, (1, 0, 2))                         # (S, N, 1)


# ----------------------------------- main ----------------------------------- #

if __name__ == "__main__":
    # Small shapes consistent with the module's forward:
    # seq S=8, batch N=2, d_model ninp=32, nhead=4, nhid=64, nlayers=2
    S, N, E = 8, 2, 32
    nhead, nhid, nlayers = 4, 64, 2

    key = jax.random.PRNGKey(0)
    src = jax.random.normal(jax.random.fold_in(key, 7), (S, N, E), jnp.float32)
    params = make_params(key, E, nhead, nhid, nlayers)
    packed = pack_params(params, nhead)

    out = transformer_forward(src, packed, nhead, batch_tile=1)
    out = jax.block_until_ready(out)
    assert out.shape == (S, N, 1) and out.dtype == jnp.float32
    assert bool(jnp.all(jnp.isfinite(out)))
    print("KERNEL_OK")
</pallas_src>

<mosaic_0001>
module attributes {stable_mosaic.version = 11 : i64} {
  func.func @fused_transformer_kernel(%arg0: i32, %arg1: i32, %arg2: memref<1x8x32xf32, #tpu.memory_space<vmem>>, %arg3: memref<8x32xf32, #tpu.memory_space<vmem>>, %arg4: memref<1x4x8x32xbf16, #tpu.memory_space<vmem>>, %arg5: memref<1x4x1x8xf32, #tpu.memory_space<vmem>>, %arg6: memref<1x4x8x32xbf16, #tpu.memory_space<vmem>>, %arg7: memref<1x4x1x8xf32, #tpu.memory_space<vmem>>, %arg8: memref<1x4x8x32xbf16, #tpu.memory_space<vmem>>, %arg9: memref<1x4x1x8xf32, #tpu.memory_space<vmem>>, %arg10: memref<1x4x8x32xbf16, #tpu.memory_space<vmem>>, %arg11: memref<1x1x32xf32, #tpu.memory_space<vmem>>, %arg12: memref<1x1x32xf32, #tpu.memory_space<vmem>>, %arg13: memref<1x1x32xf32, #tpu.memory_space<vmem>>, %arg14: memref<1x64x32xbf16, #tpu.memory_space<vmem>>, %arg15: memref<1x1x64xf32, #tpu.memory_space<vmem>>, %arg16: memref<1x32x64xbf16, #tpu.memory_space<vmem>>, %arg17: memref<1x1x32xf32, #tpu.memory_space<vmem>>, %arg18: memref<1x1x32xf32, #tpu.memory_space<vmem>>, %arg19: memref<1x1x32xf32, #tpu.memory_space<vmem>>, %arg20: memref<1x32xf32, #tpu.memory_space<vmem>>, %arg21: memref<1x1xf32, #tpu.memory_space<vmem>>, %arg22: memref<1x8x1xf32, #tpu.memory_space<vmem>>, %arg23: memref<8x32xf32, #tpu.memory_space<vmem>>) attributes {dimension_semantics = [#tpu.dimension_semantics<parallel>, #tpu.dimension_semantics<arbitrary>], iteration_bounds = array<i64: 2, 2>, scalar_prefetch = 0 : i64, scratch_operands = 1 : i64, tpu.core_type = #tpu.core_type<tc>, window_params = [{transform_indices = @transform_0, window_bounds = array<i64: 1, 8, 32>}, {pipeline_mode = #tpu.pipeline_mode<synchronous>, transform_indices = @transform_1, window_bounds = array<i64: 8, 32>}, {transform_indices = @transform_2, window_bounds = array<i64: 1, 4, 8, 32>}, {transform_indices = @transform_3, window_bounds = array<i64: 1, 4, 1, 8>}, {transform_indices = @transform_4, window_bounds = array<i64: 1, 4, 8, 32>}, {transform_indices = @transform_5, window_bounds = array<i64: 1, 4, 1, 8>}, {transform_indices = @transform_6, window_bounds = array<i64: 1, 4, 8, 32>}, {transform_indices = @transform_7, window_bounds = array<i64: 1, 4, 1, 8>}, {transform_indices = @transform_8, window_bounds = array<i64: 1, 4, 8, 32>}, {transform_indices = @transform_9, window_bounds = array<i64: 1, 1, 32>}, {transform_indices = @transform_10, window_bounds = array<i64: 1, 1, 32>}, {transform_indices = @transform_11, window_bounds = array<i64: 1, 1, 32>}, {transform_indices = @transform_12, window_bounds = array<i64: 1, 64, 32>}, {transform_indices = @transform_13, window_bounds = array<i64: 1, 1, 64>}, {transform_indices = @transform_14, window_bounds = array<i64: 1, 32, 64>}, {transform_indices = @transform_15, window_bounds = array<i64: 1, 1, 32>}, {transform_indices = @transform_16, window_bounds = array<i64: 1, 1, 32>}, {transform_indices = @transform_17, window_bounds = array<i64: 1, 1, 32>}, {pipeline_mode = #tpu.pipeline_mode<synchronous>, transform_indices = @transform_18, window_bounds = array<i64: 1, 32>}, {pipeline_mode = #tpu.pipeline_mode<synchronous>, transform_indices = @transform_19, window_bounds = array<i64: 1, 1>}, {transform_indices = @transform_20, window_bounds = array<i64: 1, 8, 1>}]} {
    %c0_i32 = arith.constant 0 : i32
    %0 = arith.cmpi eq, %arg1, %c0_i32 : i32
    %1 = arith.extui %0 : i1 to i32
    %c0_i32_0 = arith.constant 0 : i32
    %2 = arith.cmpi ne, %1, %c0_i32_0 : i32
    scf.if %2 {
      %c0_82 = arith.constant 0 : index
      %c0_83 = arith.constant 0 : index
      %c0_84 = arith.constant 0 : index
      %132 = vector.load %arg2[%c0_82, %c0_83, %c0_84] : memref<1x8x32xf32, #tpu.memory_space<vmem>>, vector<1x8x32xf32>
      %c0_85 = arith.constant 0 : index
      %c0_86 = arith.constant 0 : index
      %133 = vector.load %arg3[%c0_85, %c0_86] : memref<8x32xf32, #tpu.memory_space<vmem>>, vector<8x32xf32>
      %134 = vector.shape_cast %133 : vector<8x32xf32> to vector<1x8x32xf32>
      %135 = arith.addf %132, %134 : vector<1x8x32xf32>
      %136 = vector.shape_cast %135 : vector<1x8x32xf32> to vector<8x32xf32>
      %c0_87 = arith.constant 0 : index
      %c0_88 = arith.constant 0 : index
      %137 = vector.load %arg23[%c0_87, %c0_88] : memref<8x32xf32, #tpu.memory_space<vmem>>, vector<8x32xf32>
      tpu.vector_store %arg23[%c0_87, %c0_88], %136 {strides = array<i32>} : memref<8x32xf32, #tpu.memory_space<vmem>>, vector<8x32xf32>,
    } else {
    }
    %c0 = arith.constant 0 : index
    %c0_1 = arith.constant 0 : index
    %3 = vector.load %arg23[%c0, %c0_1] : memref<8x32xf32, #tpu.memory_space<vmem>>, vector<8x32xf32>
    %4 = arith.truncf %3 : vector<8x32xf32> to vector<8x32xbf16>
    %5 = vector.shape_cast %4 : vector<8x32xbf16> to vector<1x8x32xbf16>
    %6 = vector.shape_cast %5 : vector<1x8x32xbf16> to vector<1x8x32xbf16>
    %7 = vector.broadcast %6 : vector<1x8x32xbf16> to vector<4x8x32xbf16>
    %c0_2 = arith.constant 0 : index
    %c0_3 = arith.constant 0 : index
    %c0_4 = arith.constant 0 : index
    %c0_5 = arith.constant 0 : index
    %8 = vector.load %arg4[%c0_2, %c0_3, %c0_4, %c0_5] : memref<1x4x8x32xbf16, #tpu.memory_space<vmem>>, vector<1x4x8x32xbf16>
    %9 = vector.shape_cast %8 : vector<1x4x8x32xbf16> to vector<4x8x32xbf16>
    %cst = arith.constant dense<0.000000e+00> : vector<4x8x8xf32>
    %10 = tpu.matmul %7, %9, %cst {dimension_numbers = #tpu.dot_dimension_numbers<[2], [2], [1], [1], [0, 0, 0, 1, 1, 1], [0], [0]>} : vector<4x8x32xbf16>, vector<4x8x32xbf16>, vector<4x8x8xf32> -> vector<4x8x8xf32>
    %c0_6 = arith.constant 0 : index
    %c0_7 = arith.constant 0 : index
    %c0_8 = arith.constant 0 : index
    %c0_9 = arith.constant 0 : index
    %11 = vector.load %arg5[%c0_6, %c0_7, %c0_8, %c0_9] : memref<1x4x1x8xf32, #tpu.memory_space<vmem>>, vector<1x4x1x8xf32>
    %12 = vector.shape_cast %11 : vector<1x4x1x8xf32> to vector<4x1x8xf32>
    %13 = vector.broadcast %12 : vector<4x1x8xf32> to vector<4x8x8xf32>
    %14 = arith.addf %10, %13 : vector<4x8x8xf32>
    %c0_10 = arith.constant 0 : index
    %c0_11 = arith.constant 0 : index
    %c0_12 = arith.constant 0 : index
    %c0_13 = arith.constant 0 : index
    %15 = vector.load %arg6[%c0_10, %c0_11, %c0_12, %c0_13] : memref<1x4x8x32xbf16, #tpu.memory_space<vmem>>, vector<1x4x8x32xbf16>
    %16 = vector.shape_cast %15 : vector<1x4x8x32xbf16> to vector<4x8x32xbf16>
    %cst_14 = arith.constant dense<0.000000e+00> : vector<4x8x8xf32>
    %17 = tpu.matmul %7, %16, %cst_14 {dimension_numbers = #tpu.dot_dimension_numbers<[2], [2], [1], [1], [0, 0, 0, 1, 1, 1], [0], [0]>} : vector<4x8x32xbf16>, vector<4x8x32xbf16>, vector<4x8x8xf32> -> vector<4x8x8xf32>
    %c0_15 = arith.constant 0 : index
    %c0_16 = arith.constant 0 : index
    %c0_17 = arith.constant 0 : index
    %c0_18 = arith.constant 0 : index
    %18 = vector.load %arg7[%c0_15, %c0_16, %c0_17, %c0_18] : memref<1x4x1x8xf32, #tpu.memory_space<vmem>>, vector<1x4x1x8xf32>
    %19 = vector.shape_cast %18 : vector<1x4x1x8xf32> to vector<4x1x8xf32>
    %20 = vector.broadcast %19 : vector<4x1x8xf32> to vector<4x8x8xf32>
    %21 = arith.addf %17, %20 : vector<4x8x8xf32>
    %c0_19 = arith.constant 0 : index
    %c0_20 = arith.constant 0 : index
    %c0_21 = arith.constant 0 : index
    %c0_22 = arith.constant 0 : index
    %22 = vector.load %arg8[%c0_19, %c0_20, %c0_21, %c0_22] : memref<1x4x8x32xbf16, #tpu.memory_space<vmem>>, vector<1x4x8x32xbf16>
    %23 = vector.shape_cast %22 : vector<1x4x8x32xbf16> to vector<4x8x32xbf16>
    %cst_23 = arith.constant dense<0.000000e+00> : vector<4x8x8xf32>
    %24 = tpu.matmul %7, %23, %cst_23 {dimension_numbers = #tpu.dot_dimension_numbers<[2], [2], [1], [1], [0, 0, 0, 1, 1, 1], [0], [0]>} : vector<4x8x32xbf16>, vector<4x8x32xbf16>, vector<4x8x8xf32> -> vector<4x8x8xf32>
    %c0_24 = arith.constant 0 : index
    %c0_25 = arith.constant 0 : index
    %c0_26 = arith.constant 0 : index
    %c0_27 = arith.constant 0 : index
    %25 = vector.load %arg9[%c0_24, %c0_25, %c0_26, %c0_27] : memref<1x4x1x8xf32, #tpu.memory_space<vmem>>, vector<1x4x1x8xf32>
    %26 = vector.shape_cast %25 : vector<1x4x1x8xf32> to vector<4x1x8xf32>
    %27 = vector.broadcast %26 : vector<4x1x8xf32> to vector<4x8x8xf32>
    %28 = arith.addf %24, %27 : vector<4x8x8xf32>
    %cst_28 = arith.constant 0.353553385 : f32
    %29 = vector.broadcast %cst_28 : f32 to vector<4x8x8xf32>
    %30 = arith.mulf %14, %29 : vector<4x8x8xf32>
    %31 = arith.truncf %30 : vector<4x8x8xf32> to vector<4x8x8xbf16>
    %32 = arith.truncf %21 : vector<4x8x8xf32> to vector<4x8x8xbf16>
    %cst_29 = arith.constant dense<0.000000e+00> : vector<4x8x8xf32>
    %33 = tpu.matmul %31, %32, %cst_29 {dimension_numbers = #tpu.dot_dimension_numbers<[2], [2], [1], [1], [0, 0, 0, 1, 1, 1], [0], [0]>} : vector<4x8x8xbf16>, vector<4x8x8xbf16>, vector<4x8x8xf32> -> vector<4x8x8xf32>
    %cst_30 = arith.constant dense<0xFF800000> : vector<4x8xf32>
    %34 = vector.multi_reduction <maximumf>, %33, %cst_30 [2] : vector<4x8x8xf32> to vector<4x8xf32>
    %35 = vector.shape_cast %34 : vector<4x8xf32> to vector<4x8x1xf32>
    %36 = vector.broadcast %35 : vector<4x8x1xf32> to vector<4x8x8xf32>
    %37 = arith.subf %33, %36 : vector<4x8x8xf32>
    %38 = math.exp %37 : vector<4x8x8xf32>
    %cst_31 = arith.constant dense<0.000000e+00> : vector<4x8xf32>
    %39 = vector.multi_reduction <add>, %38, %cst_31 [2] : vector<4x8x8xf32> to vector<4x8xf32>
    %40 = vector.shape_cast %39 : vector<4x8xf32> to vector<4x8x1xf32>
    %41 = tpu.reciprocal %40 {approx = true} : vector<4x8x1xf32> -> vector<4x8x1xf32>
    %42 = vector.broadcast %41 : vector<4x8x1xf32> to vector<4x8x8xf32>
    %43 = arith.mulf %38, %42 : vector<4x8x8xf32>
    %44 = arith.truncf %43 : vector<4x8x8xf32> to vector<4x8x8xbf16>
    %45 = arith.truncf %28 : vector<4x8x8xf32> to vector<4x8x8xbf16>
    %cst_32 = arith.constant dense<0.000000e+00> : vector<4x8x8xf32>
    %46 = tpu.matmul %44, %45, %cst_32 {dimension_numbers = #tpu.dot_dimension_numbers<[2], [1], [1], [2], [0, 0, 0, 1, 1, 2], [0], [0]>} : vector<4x8x8xbf16>, vector<4x8x8xbf16>, vector<4x8x8xf32> -> vector<4x8x8xf32>
    %47 = arith.truncf %46 : vector<4x8x8xf32> to vector<4x8x8xbf16>
    %c0_33 = arith.constant 0 : index
    %c0_34 = arith.constant 0 : index
    %c0_35 = arith.constant 0 : index
    %c0_36 = arith.constant 0 : index
    %48 = vector.load %arg10[%c0_33, %c0_34, %c0_35, %c0_36] : memref<1x4x8x32xbf16, #tpu.memory_space<vmem>>, vector<1x4x8x32xbf16>
    %49 = vector.shape_cast %48 : vector<1x4x8x32xbf16> to vector<4x8x32xbf16>
    %cst_37 = arith.constant dense<0.000000e+00> : vector<4x8x32xf32>
    %50 = tpu.matmul %47, %49, %cst_37 {dimension_numbers = #tpu.dot_dimension_numbers<[2], [1], [1], [2], [0, 0, 0, 1, 1, 2], [0], [0]>} : vector<4x8x8xbf16>, vector<4x8x32xbf16>, vector<4x8x32xf32> -> vector<4x8x32xf32>
    %cst_38 = arith.constant dense<0.000000e+00> : vector<8x32xf32>
    %51 = vector.multi_reduction <add>, %50, %cst_38 [0] : vector<4x8x32xf32> to vector<8x32xf32>
    %c0_39 = arith.constant 0 : index
    %c0_40 = arith.constant 0 : index
    %c0_41 = arith.constant 0 : index
    %52 = vector.load %arg11[%c0_39, %c0_40, %c0_41] : memref<1x1x32xf32, #tpu.memory_space<vmem>>, vector<1x1x32xf32>
    %53 = vector.shape_cast %52 : vector<1x1x32xf32> to vector<1x32xf32>
    %54 = vector.broadcast %53 : vector<1x32xf32> to vector<8x32xf32>
    %55 = arith.addf %51, %54 : vector<8x32xf32>
    %56 = arith.addf %3, %55 : vector<8x32xf32>
    %c0_42 = arith.constant 0 : index
    %c0_43 = arith.constant 0 : index
    %c0_44 = arith.constant 0 : index
    %57 = vector.load %arg12[%c0_42, %c0_43, %c0_44] : memref<1x1x32xf32, #tpu.memory_space<vmem>>, vector<1x1x32xf32>
    %58 = vector.shape_cast %57 : vector<1x1x32xf32> to vector<1x32xf32>
    %c0_45 = arith.constant 0 : index
    %c0_46 = arith.constant 0 : index
    %c0_47 = arith.constant 0 : index
    %59 = vector.load %arg13[%c0_45, %c0_46, %c0_47] : memref<1x1x32xf32, #tpu.memory_space<vmem>>, vector<1x1x32xf32>
    %60 = vector.shape_cast %59 : vector<1x1x32xf32> to vector<1x32xf32>
    %cst_48 = arith.constant dense<0.000000e+00> : vector<8xf32>
    %61 = vector.multi_reduction <add>, %56, %cst_48 [1] : vector<8x32xf32> to vector<8xf32>
    %62 = vector.shape_cast %61 : vector<8xf32> to vector<8x1xf32>
    %cst_49 = arith.constant 3.200000e+01 : f32
    %63 = vector.broadcast %cst_49 : f32 to vector<8x1xf32>
    %64 = arith.divf %62, %63 : vector<8x1xf32>
    %65 = vector.broadcast %64 : vector<8x1xf32> to vector<8x32xf32>
    %66 = arith.subf %56, %65 : vector<8x32xf32>
    %67 = arith.mulf %66, %66 : vector<8x32xf32>
    %cst_50 = arith.constant dense<0.000000e+00> : vector<8xf32>
    %68 = vector.multi_reduction <add>, %67, %cst_50 [1] : vector<8x32xf32> to vector<8xf32>
    %69 = vector.shape_cast %68 : vector<8xf32> to vector<8x1xf32>
    %cst_51 = arith.constant 3.200000e+01 : f32
    %70 = vector.broadcast %cst_51 : f32 to vector<8x1xf32>
    %71 = arith.divf %69, %70 : vector<8x1xf32>
    %72 = vector.broadcast %64 : vector<8x1xf32> to vector<8x32xf32>
    %73 = arith.subf %56, %72 : vector<8x32xf32>
    %cst_52 = arith.constant 9.99999974E-6 : f32
    %74 = vector.broadcast %cst_52 : f32 to vector<8x1xf32>
    %75 = arith.addf %71, %74 : vector<8x1xf32>
    %76 = math.rsqrt %75 : vector<8x1xf32>
    %77 = vector.broadcast %76 : vector<8x1xf32> to vector<8x32xf32>
    %78 = arith.mulf %73, %77 : vector<8x32xf32>
    %79 = vector.broadcast %58 : vector<1x32xf32> to vector<8x32xf32>
    %80 = arith.mulf %78, %79 : vector<8x32xf32>
    %81 = vector.broadcast %60 : vector<1x32xf32> to vector<8x32xf32>
    %82 = arith.addf %80, %81 : vector<8x32xf32>
    %83 = arith.truncf %82 : vector<8x32xf32> to vector<8x32xbf16>
    %c0_53 = arith.constant 0 : index
    %c0_54 = arith.constant 0 : index
    %c0_55 = arith.constant 0 : index
    %84 = vector.load %arg14[%c0_53, %c0_54, %c0_55] : memref<1x64x32xbf16, #tpu.memory_space<vmem>>, vector<1x64x32xbf16>
    %85 = vector.shape_cast %84 : vector<1x64x32xbf16> to vector<64x32xbf16>
    %cst_56 = arith.constant dense<0.000000e+00> : vector<8x64xf32>
    %86 = tpu.matmul %83, %85, %cst_56 {dimension_numbers = #tpu.dot_dimension_numbers<[1], [1], [0], [0], [0, 0, 1, 0], [], []>} : vector<8x32xbf16>, vector<64x32xbf16>, vector<8x64xf32> -> vector<8x64xf32>
    %c0_57 = arith.constant 0 : index
    %c0_58 = arith.constant 0 : index
    %c0_59 = arith.constant 0 : index
    %87 = vector.load %arg15[%c0_57, %c0_58, %c0_59] : memref<1x1x64xf32, #tpu.memory_space<vmem>>, vector<1x1x64xf32>
    %88 = vector.shape_cast %87 : vector<1x1x64xf32> to vector<1x64xf32>
    %89 = vector.broadcast %88 : vector<1x64xf32> to vector<8x64xf32>
    %90 = arith.addf %86, %89 : vector<8x64xf32>
    %cst_60 = arith.constant 0.000000e+00 : f32
    %91 = vector.broadcast %cst_60 : f32 to vector<8x64xf32>
    %92 = arith.maximumf %90, %91 : vector<8x64xf32>
    %93 = arith.truncf %92 : vector<8x64xf32> to vector<8x64xbf16>
    %c0_61 = arith.constant 0 : index
    %c0_62 = arith.constant 0 : index
    %c0_63 = arith.constant 0 : index
    %94 = vector.load %arg16[%c0_61, %c0_62, %c0_63] : memref<1x32x64xbf16, #tpu.memory_space<vmem>>, vector<1x32x64xbf16>
    %95 = vector.shape_cast %94 : vector<1x32x64xbf16> to vector<32x64xbf16>
    %cst_64 = arith.constant dense<0.000000e+00> : vector<8x32xf32>
    %96 = tpu.matmul %93, %95, %cst_64 {dimension_numbers = #tpu.dot_dimension_numbers<[1], [1], [0], [0], [0, 0, 1, 0], [], []>} : vector<8x64xbf16>, vector<32x64xbf16>, vector<8x32xf32> -> vector<8x32xf32>
    %c0_65 = arith.constant 0 : index
    %c0_66 = arith.constant 0 : index
    %c0_67 = arith.constant 0 : index
    %97 = vector.load %arg17[%c0_65, %c0_66, %c0_67] : memref<1x1x32xf32, #tpu.memory_space<vmem>>, vector<1x1x32xf32>
    %98 = vector.shape_cast %97 : vector<1x1x32xf32> to vector<1x32xf32>
    %99 = vector.broadcast %98 : vector<1x32xf32> to vector<8x32xf32>
    %100 = arith.addf %96, %99 : vector<8x32xf32>
    %101 = arith.addf %82, %100 : vector<8x32xf32>
    %c0_68 = arith.constant 0 : index
    %c0_69 = arith.constant 0 : index
    %c0_70 = arith.constant 0 : index
    %102 = vector.load %arg18[%c0_68, %c0_69, %c0_70] : memref<1x1x32xf32, #tpu.memory_space<vmem>>, vector<1x1x32xf32>
    %103 = vector.shape_cast %102 : vector<1x1x32xf32> to vector<1x32xf32>
    %c0_71 = arith.constant 0 : index
    %c0_72 = arith.constant 0 : index
    %c0_73 = arith.constant 0 : index
    %104 = vector.load %arg19[%c0_71, %c0_72, %c0_73] : memref<1x1x32xf32, #tpu.memory_space<vmem>>, vector<1x1x32xf32>
    %105 = vector.shape_cast %104 : vector<1x1x32xf32> to vector<1x32xf32>
    %cst_74 = arith.constant dense<0.000000e+00> : vector<8xf32>
    %106 = vector.multi_reduction <add>, %101, %cst_74 [1] : vector<8x32xf32> to vector<8xf32>
    %107 = vector.shape_cast %106 : vector<8xf32> to vector<8x1xf32>
    %cst_75 = arith.constant 3.200000e+01 : f32
    %108 = vector.broadcast %cst_75 : f32 to vector<8x1xf32>
    %109 = arith.divf %107, %108 : vector<8x1xf32>
    %110 = vector.broadcast %109 : vector<8x1xf32> to vector<8x32xf32>
    %111 = arith.subf %101, %110 : vector<8x32xf32>
    %112 = arith.mulf %111, %111 : vector<8x32xf32>
    %cst_76 = arith.constant dense<0.000000e+00> : vector<8xf32>
    %113 = vector.multi_reduction <add>, %112, %cst_76 [1] : vector<8x32xf32> to vector<8xf32>
    %114 = vector.shape_cast %113 : vector<8xf32> to vector<8x1xf32>
    %cst_77 = arith.constant 3.200000e+01 : f32
    %115 = vector.broadcast %cst_77 : f32 to vector<8x1xf32>
    %116 = arith.divf %114, %115 : vector<8x1xf32>
    %117 = vector.broadcast %109 : vector<8x1xf32> to vector<8x32xf32>
    %118 = arith.subf %101, %117 : vector<8x32xf32>
    %cst_78 = arith.constant 9.99999974E-6 : f32
    %119 = vector.broadcast %cst_78 : f32 to vector<8x1xf32>
    %120 = arith.addf %116, %119 : vector<8x1xf32>
    %121 = math.rsqrt %120 : vector<8x1xf32>
    %122 = vector.broadcast %121 : vector<8x1xf32> to vector<8x32xf32>
    %123 = arith.mulf %118, %122 : vector<8x32xf32>
    %124 = vector.broadcast %103 : vector<1x32xf32> to vector<8x32xf32>
    %125 = arith.mulf %123, %124 : vector<8x32xf32>
    %126 = vector.broadcast %105 : vector<1x32xf32> to vector<8x32xf32>
    %127 = arith.addf %125, %126 : vector<8x32xf32>
    %c0_79 = arith.constant 0 : index
    %c0_80 = arith.constant 0 : index
    %128 = vector.load %arg23[%c0_79, %c0_80] : memref<8x32xf32, #tpu.memory_space<vmem>>, vector<8x32xf32>
    tpu.vector_store %arg23[%c0_79, %c0_80], %127 {strides = array<i32>} : memref<8x32xf32, #tpu.memory_space<vmem>>, vector<8x32xf32>,
    %c1_i32 = arith.constant 1 : i32
    %129 = arith.cmpi eq, %arg1, %c1_i32 : i32
    %130 = arith.extui %129 : i1 to i32
    %c0_i32_81 = arith.constant 0 : i32
    %131 = arith.cmpi ne, %130, %c0_i32_81 : i32
    scf.if %131 {
      %c0_82 = arith.constant 0 : index
      %c0_83 = arith.constant 0 : index
      %132 = vector.load %arg20[%c0_82, %c0_83] : memref<1x32xf32, #tpu.memory_space<vmem>>, vector<1x32xf32>
      %133 = vector.broadcast %132 : vector<1x32xf32> to vector<8x32xf32>
      %134 = arith.mulf %127, %133 : vector<8x32xf32>
      %cst_84 = arith.constant dense<0.000000e+00> : vector<8xf32>
      %135 = vector.multi_reduction <add>, %134, %cst_84 [1] : vector<8x32xf32> to vector<8xf32>
      %136 = vector.shape_cast %135 : vector<8xf32> to vector<8x1xf32>
      %c0_85 = arith.constant 0 : index
      %c0_86 = arith.constant 0 : index
      %137 = vector.load %arg21[%c0_85, %c0_86] : memref<1x1xf32, #tpu.memory_space<vmem>>, vector<1x1xf32>
      %138 = vector.broadcast %137 : vector<1x1xf32> to vector<8x1xf32>
      %139 = arith.addf %136, %138 : vector<8x1xf32>
      %140 = vector.shape_cast %139 : vector<8x1xf32> to vector<1x8x1xf32>
      %c0_87 = arith.constant 0 : index
      %c0_88 = arith.constant 0 : index
      %c0_89 = arith.constant 0 : index
      %141 = vector.load %arg22[%c0_87, %c0_88, %c0_89] : memref<1x8x1xf32, #tpu.memory_space<vmem>>, vector<1x8x1xf32>
      tpu.vector_store %arg22[%c0_87, %c0_88, %c0_89], %140 {strides = array<i32>} : memref<1x8x1xf32, #tpu.memory_space<vmem>>, vector<1x8x1xf32>,
    } else {
    }
    return
  }
  func.func @transform_0(%arg0: i32, %arg1: i32) -> (i32, i32, i32) {
    %c0_i32 = arith.constant 0 : i32
    %c0_i32_0 = arith.constant 0 : i32
    %c0_i32_1 = arith.constant 0 : i32
    return %arg0, %c0_i32, %c0_i32_0 : i32, i32, i32
  }
  func.func @transform_1(%arg0: i32, %arg1: i32) -> (i32, i32) {
    %c0_i32 = arith.constant 0 : i32
    %c0_i32_0 = arith.constant 0 : i32
    %c0_i32_1 = arith.constant 0 : i32
    return %c0_i32, %c0_i32_0 : i32, i32
  }
  func.func @transform_2(%arg0: i32, %arg1: i32) -> (i32, i32, i32, i32) {
    %c0_i32 = arith.constant 0 : i32
    %c0_i32_0 = arith.constant 0 : i32
    %c0_i32_1 = arith.constant 0 : i32
    %c0_i32_2 = arith.constant 0 : i32
    return %arg1, %c0_i32, %c0_i32_0, %c0_i32_1 : i32, i32, i32, i32
  }
  func.func @transform_3(%arg0: i32, %arg1: i32) -> (i32, i32, i32, i32) {
    %c0_i32 = arith.constant 0 : i32
    %c0_i32_0 = arith.constant 0 : i32
    %c0_i32_1 = arith.constant 0 : i32
    %c0_i32_2 = arith.constant 0 : i32
    return %arg1, %c0_i32, %c0_i32_0, %c0_i32_1 : i32, i32, i32, i32
  }
  func.func @transform_4(%arg0: i32, %arg1: i32) -> (i32, i32, i32, i32) {
    %c0_i32 = arith.constant 0 : i32
    %c0_i32_0 = arith.constant 0 : i32
    %c0_i32_1 = arith.constant 0 : i32
    %c0_i32_2 = arith.constant 0 : i32
    return %arg1, %c0_i32, %c0_i32_0, %c0_i32_1 : i32, i32, i32, i32
  }
  func.func @transform_5(%arg0: i32, %arg1: i32) -> (i32, i32, i32, i32) {
    %c0_i32 = arith.constant 0 : i32
    %c0_i32_0 = arith.constant 0 : i32
    %c0_i32_1 = arith.constant 0 : i32
    %c0_i32_2 = arith.constant 0 : i32
    return %arg1, %c0_i32, %c0_i32_0, %c0_i32_1 : i32, i32, i32, i32
  }
  func.func @transform_6(%arg0: i32, %arg1: i32) -> (i32, i32, i32, i32) {
    %c0_i32 = arith.constant 0 : i32
    %c0_i32_0 = arith.constant 0 : i32
    %c0_i32_1 = arith.constant 0 : i32
    %c0_i32_2 = arith.constant 0 : i32
    return %arg1, %c0_i32, %c0_i32_0, %c0_i32_1 : i32, i32, i32, i32
  }
  func.func @transform_7(%arg0: i32, %arg1: i32) -> (i32, i32, i32, i32) {
    %c0_i32 = arith.constant 0 : i32
    %c0_i32_0 = arith.constant 0 : i32
    %c0_i32_1 = arith.constant 0 : i32
    %c0_i32_2 = arith.constant 0 : i32
    return %arg1, %c0_i32, %c0_i32_0, %c0_i32_1 : i32, i32, i32, i32
  }
  func.func @transform_8(%arg0: i32, %arg1: i32) -> (i32, i32, i32, i32) {
    %c0_i32 = arith.constant 0 : i32
    %c0_i32_0 = arith.constant 0 : i32
    %c0_i32_1 = arith.constant 0 : i32
    %c0_i32_2 = arith.constant 0 : i32
    return %arg1, %c0_i32, %c0_i32_0, %c0_i32_1 : i32, i32, i32, i32
  }
  func.func @transform_9(%arg0: i32, %arg1: i32) -> (i32, i32, i32) {
    %c0_i32 = arith.constant 0 : i32
    %c0_i32_0 = arith.constant 0 : i32
    %c0_i32_1 = arith.constant 0 : i32
    return %arg1, %c0_i32, %c0_i32_0 : i32, i32, i32
  }
  func.func @transform_10(%arg0: i32, %arg1: i32) -> (i32, i32, i32) {
    %c0_i32 = arith.constant 0 : i32
    %c0_i32_0 = arith.constant 0 : i32
    %c0_i32_1 = arith.constant 0 : i32
    return %arg1, %c0_i32, %c0_i32_0 : i32, i32, i32
  }
  func.func @transform_11(%arg0: i32, %arg1: i32) -> (i32, i32, i32) {
    %c0_i32 = arith.constant 0 : i32
    %c0_i32_0 = arith.constant 0 : i32
    %c0_i32_1 = arith.constant 0 : i32
    return %arg1, %c0_i32, %c0_i32_0 : i32, i32, i32
  }
  func.func @transform_12(%arg0: i32, %arg1: i32) -> (i32, i32, i32) {
    %c0_i32 = arith.constant 0 : i32
    %c0_i32_0 = arith.constant 0 : i32
    %c0_i32_1 = arith.constant 0 : i32
    return %arg1, %c0_i32, %c0_i32_0 : i32, i32, i32
  }
  func.func @transform_13(%arg0: i32, %arg1: i32) -> (i32, i32, i32) {
    %c0_i32 = arith.constant 0 : i32
    %c0_i32_0 = arith.constant 0 : i32
    %c0_i32_1 = arith.constant 0 : i32
    return %arg1, %c0_i32, %c0_i32_0 : i32, i32, i32
  }
  func.func @transform_14(%arg0: i32, %arg1: i32) -> (i32, i32, i32) {
    %c0_i32 = arith.constant 0 : i32
    %c0_i32_0 = arith.constant 0 : i32
    %c0_i32_1 = arith.constant 0 : i32
    return %arg1, %c0_i32, %c0_i32_0 : i32, i32, i32
  }
  func.func @transform_15(%arg0: i32, %arg1: i32) -> (i32, i32, i32) {
    %c0_i32 = arith.constant 0 : i32
    %c0_i32_0 = arith.constant 0 : i32
    %c0_i32_1 = arith.constant 0 : i32
    return %arg1, %c0_i32, %c0_i32_0 : i32, i32, i32
  }
  func.func @transform_16(%arg0: i32, %arg1: i32) -> (i32, i32, i32) {
    %c0_i32 = arith.constant 0 : i32
    %c0_i32_0 = arith.constant 0 : i32
    %c0_i32_1 = arith.constant 0 : i32
    return %arg1, %c0_i32, %c0_i32_0 : i32, i32, i32
  }
  func.func @transform_17(%arg0: i32, %arg1: i32) -> (i32, i32, i32) {
    %c0_i32 = arith.constant 0 : i32
    %c0_i32_0 = arith.constant 0 : i32
    %c0_i32_1 = arith.constant 0 : i32
    return %arg1, %c0_i32, %c0_i32_0 : i32, i32, i32
  }
  func.func @transform_18(%arg0: i32, %arg1: i32) -> (i32, i32) {
    %c0_i32 = arith.constant 0 : i32
    %c0_i32_0 = arith.constant 0 : i32
    %c0_i32_1 = arith.constant 0 : i32
    return %c0_i32, %c0_i32_0 : i32, i32
  }
  func.func @transform_19(%arg0: i32, %arg1: i32) -> (i32, i32) {
    %c0_i32 = arith.constant 0 : i32
    %c0_i32_0 = arith.constant 0 : i32
    %c0_i32_1 = arith.constant 0 : i32
    return %c0_i32, %c0_i32_0 : i32, i32
  }
  func.func @transform_20(%arg0: i32, %arg1: i32) -> (i32, i32, i32) {
    %c0_i32 = arith.constant 0 : i32
    %c0_i32_0 = arith.constant 0 : i32
    %c0_i32_1 = arith.constant 0 : i32
    return %arg0, %c0_i32, %c0_i32_0 : i32, i32, i32
  }
}

</mosaic_0001>

<bundles_post_ra>
// kernel: tpu_custom_call.1
= control target key start
LH: loop header
LB: loop body
LE: loop exit
PB: predicated region body
PF: predicated region fallthrough
CT: control target
= control target key end

     0   :  { %s4289_s0 = inlined_call_operand.hbm [shape: f32[2,8,32], index: 0, kind: input, shape index: {}]   ;;  %s4290_s1 = inlined_call_operand.hbm [shape: f32[8,32], index: 1, kind: input, shape index: {}]   ;;  %s4291_s2 = inlined_call_operand.vmem [shape: bf16[2,4,8,32], index: 2, kind: input, shape index: {}]   ;;  %s4292_s3 = inlined_call_operand.hbm [shape: f32[2,4,1,8], index: 3, kind: input, shape index: {}]   ;;  %s4293_s4 = inlined_call_operand.vmem [shape: bf16[2,4,8,32], index: 4, kind: input, shape index: {}]   ;;  %s4294_s5 = inlined_call_operand.vmem [shape: f32[2,4,1,8], index: 5, kind: input, shape index: {}]   ;;  %s4295_s6 = inlined_call_operand.vmem [shape: bf16[2,4,8,32], index: 6, kind: input, shape index: {}]   ;;  %s4296_s7 = inlined_call_operand.hbm [shape: f32[2,4,1,8], index: 7, kind: input, shape index: {}]   ;;  %s4297_s8 = inlined_call_operand.hbm [shape: bf16[2,4,8,32], index: 8, kind: input, shape index: {}]   ;;  %s4298_s9 = inlined_call_operand.vmem [shape: f32[2,1,32], index: 9, kind: input, shape index: {}]   ;;  %s4299_s10 = inlined_call_operand.vmem [shape: f32[2,1,32], index: 10, kind: input, shape index: {}]   ;;  %s4300_s11 = inlined_call_operand.vmem [shape: f32[2,1,32], index: 11, kind: input, shape index: {}]   ;;  %s4301_s12 = inlined_call_operand.vmem [shape: bf16[2,64,32], index: 12, kind: input, shape index: {}]   ;;  %s4302_s13 = inlined_call_operand.vmem [shape: f32[2,1,64], index: 13, kind: input, shape index: {}]   ;;  %s4303_s14 = inlined_call_operand.hbm [shape: bf16[2,32,64], index: 14, kind: input, shape index: {}]   ;;  %s4304_s15 = inlined_call_operand.vmem [shape: f32[2,1,32], index: 15, kind: input, shape index: {}]   ;;  %s4305_s16 = inlined_call_operand.vmem [shape: f32[2,1,32], index: 16, kind: input, shape index: {}]   ;;  %s4306_s17 = inlined_call_operand.vmem [shape: f32[2,1,32], index: 17, kind: input, shape index: {}]   ;;  %s4307_s18 = inlined_call_operand.vmem [shape: f32[1,32], index: 18, kind: input, shape index: {}]   ;;  %s4308_s19 = inlined_call_operand.<no memory space> [shape: f32[1,1], index: 19, kind: input, shape index: {}]   ;;  %s4309_s20 = inlined_call_operand.vmem [shape: f32[2,8,1], index: 20, kind: output, shape index: {}]  }
   0x1   :  { %4325 = sst [smem:[#allocation28_spill]] %s4289_s0  ;;  %v25_v0 = vstv %s4308_s19 }
   0x2   :  { %4326 = sst [smem:[#allocation29_spill]] %s4290_s1  ;;  %26 = vst [vmem:[#allocation3] sm:$0x1] %v25_v0 }
   0x3   :  { %4327 = sst [smem:[#allocation30_spill]] %s4291_s2 }
   0x4   :  { %4328 = sst [smem:[#allocation31_spill]] %s4292_s3 }
   0x5   :  { %4329 = sst [smem:[#allocation32_spill]] %s4293_s4 }
   0x6   :  { %4330 = sst [smem:[#allocation33_spill]] %s4294_s5 }
   0x7   :  { %4331 = sst [smem:[#allocation34_spill]] %s4295_s6 }
   0x8   :  { %4332 = sst [smem:[#allocation35_spill]] %s4296_s7 }
   0x9   :  { %4333 = sst [smem:[#allocation36_spill]] %s4297_s8 }
   0xa   :  { %4334 = sst [smem:[#allocation37_spill]] %s4298_s9 }
   0xb   :  { %4335 = sst [smem:[#allocation38_spill]] %s4299_s10 }
   0xc   :  { %4336 = sst [smem:[#allocation39_spill]] %s4300_s11 }
   0xd   :  { %4337 = sst [smem:[#allocation40_spill]] %s4301_s12 }
   0xe   :  { %4338 = sst [smem:[#allocation41_spill]] %s4302_s13 }
   0xf   :  { %4339 = sst [smem:[#allocation42_spill]] %s4303_s14 }
  0x10   :  { %4340 = sst [smem:[#allocation43_spill]] %s4304_s15 }
  0x11   :  { %4341 = sst [smem:[#allocation44_spill]] %s4305_s16 }
  0x12   :  { %4342 = sst [smem:[#allocation45_spill]] %s4306_s17 }
  0x13   :  { %4343 = sst [smem:[#allocation46_spill]] %s4307_s18 }
  0x14   :  { %4344 = sst [smem:[#allocation47_spill]] %s4309_s20 }
  0x15   :  { %27 = vsyncpa [#allocation5], 0 }
  0x16   :  { %29 = vsyncpa [#allocation5 + $0x1], 0 }
  0x17   :  { %30 = vsyncpa [#allocation7], 0  ;;  %s3689_s23 = smov 0   ;;  %s3691_s24 = smov 0  }
  0x18   :  { %s3693_s2 = smov 0   ;;  %s3695_s25 = smov 0  }
  0x19   :  { %s3697_s3 = smov 0   ;;  %s3699_s26 = smov 0  }
  0x1a   :  { %s3701_s27 = smov 0   ;;  %s3703_s28 = smov 0  }
  0x1b   :  { %s3705_s19 = smov 0   ;;  %s3707_s4 = smov 0  }
  0x1c   :  { %s3709_s29 = smov 0  }
  0x1d LB: > { %4345 = sst [smem:[#allocation15_spill]] %s3531_s24  ;;  %s45_s30 = sadd.s32 1, %s3559_s19  ;;  %s3567_s29 = sphi %s3709_s29, %s36_s29   ;;  %s3563_s4 = sphi %s3707_s4, %s4414_s4   ;;  %s3559_s19 = sphi %s3705_s19, %s4413_s19   ;;  %s3555_s28 = sphi %s3703_s28, %s4412_s28   ;;  %s3551_s27 = sphi %s3701_s27, %s4411_s27   ;;  %s3547_s26 = sphi %s3699_s26, %s4410_s26   ;;  %s3543_s3 = sphi %s3697_s3, %s4409_s3   ;;  %s3539_s25 = sphi %s3695_s25, %s4408_s25   ;;  %s3535_s2 = sphi %s3693_s2, %s4407_s2   ;;  %s3531_s24 = sphi %s3691_s24, %s4406_s24   ;;  %s3527_s23 = sphi %s3689_s23, %s4405_s23  }
  0x1e   : > { %4346 = sst [smem:[#allocation16_spill]] %s3535_s2  ;;  %s48_s0 = sadd.s32 1, %s3563_s4 }
  0x1f   : > { %4347 = sst [smem:[#allocation17_spill]] %s3543_s3  ;;  %p46_p0 = scmp.ge.s32.totalorder %s45_s30, 2 }
  0x20   : > { %4348 = sst [smem:[#allocation18_spill]] %s3547_s26  ;;  %s55_s21 = sadd.s32 1, %s3547_s26 }
  0x21   : > { %4349 = sst [smem:[#allocation19_spill]] %s3559_s19  ;;  %p62_p1 = scmp.ne.s32.totalorder %s3547_s26, %s3543_s3 }
  0x22   : > { %4350 = sst [smem:[#allocation20_spill]] %s3563_s4  ;;  %p63_p2 = scmp.eq.s32.totalorder %s3567_s29, 0 }
  0x23   : > { %4351 = sst [smem:[#allocation21_spill]] %s3567_s29  ;;  %s4416_s30 = smov (%p46_p0, %s45_s30), 0 }
  0x24   : > { %4352 = sst [smem:[#allocation22_spill]] %s4416_s30  ;;  %s4418_s0 = smov (!%p46_p0, %s48_s0), %s3563_s4 }
  0x25   : > { %p3753_p3 = por %p63_p2, %p62_p1  ;;  %s125_s22 = ssub.s32 %s3559_s19, %s4416_s30 }
  0x26   : > { %p50_p4 = scmp.ge.s32.totalorder %s4418_s0, 2  ;;  %p126_p5 = scmp.eq.s32.totalorder %s125_s22, 0 }
  0x27   : > { %s128_s18 = sadd.s32 1, %s3535_s2  ;;  %p135_p6 = scmp.ne.s32.totalorder %s3535_s2, %s3531_s24 }
  0x28   : > { %s4420_s0 = smov (%p50_p4, %s4418_s0), 0  ;;  %p3180_p9 = scmp.lt.s32.totalorder %s3567_s29, 4 }
  0x29   : > { %4354 = sst [smem:[#allocation23_spill]] %s4420_s0  ;;  %s52_s17 = ssub.s32 %s3563_s4, %s4420_s0 }
  0x2a   : > { %s3765_s20 = scalar_select %p126_p5, %s3535_s2, %s128_s18  }
  0x2b   : > { %p3769_p7 = por %p135_p6, %p63_p2  ;;  %p53_p8 = scmp.eq.s32.totalorder %s52_s17, 0 }
  0x2c   : > { %4355 = sst [smem:[#allocation24_spill]] %s3765_s20  ;;  %s614_s30 = sand.u32 1, %s3567_s29  }
  0x2d   : > { %s3776_s15 = scalar_select %p53_p8, %s3547_s26, %s55_s21  }
  0x2e   : > { %s616_s22 = sand.u32 1, %s3547_s26   ;;  %s2830_s12 = sshll.u32 %s3563_s4, 7 }
  0x2f   : > { %4357 = sst [smem:[#allocation25_spill]] %s3776_s15  ;;  %s2829_s13 = sshll.u32 %s616_s22, 3 }
  0x30   : > { %s4358_s9 = sld [smem:[#allocation28_spill]]  ;;  %s618_s20 = scalar_lea.vmem [#allocation4], %s2829_s13 }
  0x31   : > { %s625_s6 = sshll.u32 %s618_s20, 4  ;;  %p3785_p10 = pnand %p3180_p9, %p3753_p3  ;;  %s626_s6 = int_to_ptr.vmem [resolvable:$true] %s625_s6 }
  0x32   : > { %p3791_p11 = pnand %p3180_p9, %p3769_p7  ;;  %s4312_s21 = sand.u32 1, %s3535_s2  }
  0x33   : > { %s3796_s22 = scalar_lea.sflag [#allocation5], %s614_s30  ;;  %p3305_p12 = pneg %p3785_p10 }
  0x34   : > { %s3569_s10 = smov [#allocation4]  }
  0x35   : > { %s3321_s11 = sshll.u32 %s3569_s10, 4  ;;  %s3322_s11 = int_to_ptr.vmem [resolvable:$false] %s3321_s11 }
  0x36   : > { %s623_s18 = scalar_lea.hbm %s4358_s9, %s2830_s12  ;;  %s3316_s9 = scalar_lea.vmem %s626_s6, 128 }
  0x37   : > { %p3317_p13 = scmp.ne.s32.totalorder %s626_s6, %s3316_s9  ;;  %s3323_s12 = scalar_lea.vmem %s3322_s11, 256 }
  0x38   : > { %p3324_p2 = scmp.lt.s32.totalorder %s626_s6, %s3322_s11  ;;  %p3325_p3 = scmp.lt.s32.totalorder %s3323_s12, %s3316_s9 }
  0x39   : > { %p3319_p0 = pnand %p3317_p13, %p3305_p12 }
  0x3a   : > { %p3326_p4 = por %p3325_p3, %p3324_p2 }
  0x3b   : > { %p3320_p1 = pneg %p3319_p0 }
  0x3d   : > { %p3327_p5 = pnand %p3326_p4, %p3320_p1 }
  0x3f   : > { %3330 = shalt.err (!%p3327_p5)
}
  0x40   : > { %3166 = dma.hbm_to_vmem [thread:$0]  (!%p3785_p10), %s623_s18, 128, %s626_s6, %s3796_s22  }
  0x41   : > { %s2831_s13 = sshll.u32 %s4312_s21, 2  ;;  %s2917_s16 = sshll.u32 %s3559_s19, 6 }
  0x42   : > { %s4361_s1 = sld [smem:[#allocation31_spill]]  ;;  %s644_s11 = scalar_lea.vmem [#allocation8], %s2831_s13 }
  0x43   : > { %s651_s9 = sshll.u32 %s644_s11, 4  ;;  %p3333_p6 = pneg %p3791_p11  ;;  %s652_s9 = int_to_ptr.vmem [resolvable:$true] %s651_s9 }
  0x44   : > { %s3344_s12 = scalar_lea.vmem %s652_s9, 64  ;;  %s3570_s0 = smov [#allocation8]  }
  0x45   : > { %p3345_p7 = scmp.ne.s32.totalorder %s652_s9, %s3344_s12  ;;  %s3349_s6 = sshll.u32 %s3570_s0, 4  ;;  %s3350_s6 = int_to_ptr.vmem [resolvable:$false] %s3349_s6 }
  0x46   : > { %s3351_s18 = scalar_lea.vmem %s3350_s6, 128  ;;  %p3352_p10 = scmp.lt.s32.totalorder %s652_s9, %s3350_s6 }
  0x47   : > { %p3347_p8 = pnand %p3345_p7, %p3333_p6  ;;  %p3353_p12 = scmp.lt.s32.totalorder %s3351_s18, %s3344_s12 }
  0x48   : > { %s650_s10 = scalar_lea.hbm %s4361_s1, %s2917_s16 }
  0x49   : > { %p3348_p9 = pneg %p3347_p8  ;;  %p3354_p13 = por %p3353_p12, %p3352_p10 }
  0x4b   : > { %p3355_p0 = pnand %p3354_p13, %p3348_p9 }
  0x4d   : > { %3358 = shalt.err (!%p3355_p0)
}
  0x4e   : > { %s3571_s20 = smov 16   ;;  %s3572_s30 = smov 1  }
  0x4f   : > { %3169 = dma.hbm_to_vmem [thread:$0]  (!%p3791_p11), %s650_s10, 64, %s652_s9, %s3796_s22, %s3571_s20, %s3571_s20, %s3572_s30  }
  0x50   : > { %s4362_s7 = sld [smem:[#allocation35_spill]]  ;;  %s688_s0 = scalar_lea.vmem [#allocation9], %s2831_s13 }
  0x51   : > { %s695_s4 = sshll.u32 %s688_s0, 4  ;;  %s4363_s6 = sand.u32 1, %s3535_s2   ;;  %s696_s4 = int_to_ptr.vmem [resolvable:$true] %s695_s4 }
  0x52   : > { %s3822_s12 = sshll.u32 %s4363_s6, 4  ;;  %s3372_s18 = scalar_lea.vmem %s696_s4, 64 }
  0x53   : > { %p3373_p1 = scmp.ne.s32.totalorder %s696_s4, %s3372_s18  ;;  %s3573_s15 = smov [#allocation9]  }
  0x54   : > { %s3377_s26 = sshll.u32 %s3573_s15, 4  ;;  %s3378_s26 = int_to_ptr.vmem [resolvable:$false] %s3377_s26 }
  0x55   : > { %p3375_p2 = pnand %p3373_p1, %p3333_p6  ;;  %s3379_s10 = scalar_lea.vmem %s3378_s26, 128 }
  0x56   : > { %s694_s21 = scalar_lea.hbm %s4362_s7, %s2917_s16  ;;  %p3380_p4 = scmp.lt.s32.totalorder %s696_s4, %s3378_s26 }
  0x57   : > { %p3376_p3 = pneg %p3375_p2  ;;  %p3381_p5 = scmp.lt.s32.totalorder %s3379_s10, %s3372_s18 }
  0x59   : > { %p3382_p7 = por %p3381_p5, %p3380_p4 }
  0x5b   : > { %p3383_p8 = pnand %p3382_p7, %p3376_p3 }
  0x5d   : > { %3386 = shalt.err (!%p3383_p8)
}
  0x5e   : > { %3172 = dma.hbm_to_vmem [thread:$0]  (!%p3791_p11), %s694_s21, 64, %s696_s4, %s3796_s22, %s3571_s20, %s3571_s20, %s3572_s30  }
  0x5f   : > { %s2919_s13 = sshll.u32 %s3559_s19, 8  ;;  %s4364_s8 = sld [smem:[#allocation36_spill]] }
  0x60   : > { %s709_s1 = scalar_lea.vmem [#allocation10], %s3822_s12  ;;  %s3574_s0 = smov [#allocation10]  }
  0x61   : > { %s716_s26 = sshll.u32 %s709_s1, 4  ;;  %s3405_s6 = sshll.u32 %s3574_s0, 4  ;;  %s717_s26 = int_to_ptr.vmem [resolvable:$true] %s716_s26  ;;  %s3406_s6 = int_to_ptr.vmem [resolvable:$false] %s3405_s6 }
  0x62   : > { %s3400_s11 = scalar_lea.vmem %s717_s26, 256  ;;  %s3407_s18 = scalar_lea.vmem %s3406_s6, 512 }
  0x63   : > { %p3401_p9 = scmp.ne.s32.totalorder %s717_s26, %s3400_s11  ;;  %p3408_p13 = scmp.lt.s32.totalorder %s717_s26, %s3406_s6 }
  0x64   : > { %p3409_p0 = scmp.lt.s32.totalorder %s3407_s18, %s3400_s11 }
  0x65   : > { %s715_s15 = scalar_lea.hbm %s4364_s8, %s2919_s13  ;;  %p3403_p10 = pnand %p3401_p9, %p3333_p6 }
  0x66   : > { %p3410_p1 = por %p3409_p0, %p3408_p13 }
  0x67   : > { %p3404_p12 = pneg %p3403_p10 }
  0x69   : > { %p3411_p2 = pnand %p3410_p1, %p3404_p12 }
  0x6b   : > { %3414 = shalt.err (!%p3411_p2)
}
  0x6c   : > { %s4316_s4 = smov 64   ;;  %s3576_s21 = smov 4  }
  0x6d   : > { %3175 = dma.hbm_to_vmem [thread:$0]  (!%p3791_p11), %s715_s15, 256, %s717_s26, %s3796_s22, %s4316_s4, %s4316_s4, %s3576_s21  }
  0x6e   : > { %s4315_s20 = sadd.s32 4294967295, %s3567_s29   ;;  %p68_p3 = scmp.ne.s32.totalorder %s3543_s3, %s3539_s25 }
  0x6f   : > { %p3851_p4 = scmp.eq.s32.totalorder %s4315_s20, 0  ;;  %p141_p5 = scmp.ne.s32.totalorder %s3531_s24, %s3527_s23 }
  0x70   : > { %p2826_p7 = scmp.ge.s32.totalorder %s3567_s29, 1  ;;  %p584_p9 = scmp.lt.s32.totalorder %s3567_s29, 5 }
  0x71   : > { %p3860_p8 = por %p3851_p4, %p68_p3  ;;  %p3867_p10 = por %p141_p5, %p3851_p4 }
  0x72   : > { %p3871_p12 = pnand %p2826_p7, %p584_p9  ;;  %s3577_s9 = smov [#allocation6]  }
  0x73   : > { %s4367_s25 = scalar_select %p3867_p10, 1, 0 }
  0x74   : > { %s597_s23 = sshll.u32 %s3577_s9, 4  ;;  %p3159_p13 = pneg %p3871_p12  ;;  %s3877_s23 = int_to_ptr.vmem [resolvable:$true] %s597_s23 }
  0x75   : > { %s4369_s14 = sld [smem:[#allocation42_spill]]  ;;  %s762_s11 = scalar_lea.vmem [#allocation11], %s3822_s12 }
  0x76   : > { %s769_s0 = sshll.u32 %s762_s11, 4  ;;  %p3887_p0 = pnand %p3159_p13, %p3851_p4  ;;  %s770_s0 = int_to_ptr.vmem [resolvable:$true] %s769_s0 }
  0x77   : > { %s3428_s18 = scalar_lea.vmem %s770_s0, 256  ;;  %s3578_s9 = smov [#allocation11]  }
  0x78   : > { %p3429_p1 = scmp.ne.s32.totalorder %s770_s0, %s3428_s18  ;;  %s3433_s20 = sshll.u32 %s3578_s9, 4  ;;  %s3434_s20 = int_to_ptr.vmem [resolvable:$false] %s3433_s20 }
  0x79   : > { %s3435_s4 = scalar_lea.vmem %s3434_s20, 512  ;;  %p3436_p5 = scmp.lt.s32.totalorder %s770_s0, %s3434_s20 }
  0x7a   : > { %p3431_p2 = pnand %p3429_p1, %p3333_p6  ;;  %p3437_p7 = scmp.lt.s32.totalorder %s3435_s4, %s3428_s18 }
  0x7b   : > { %s768_s26 = scalar_lea.hbm %s4369_s14, %s2919_s13 }
  0x7c   : > { %p3432_p3 = pneg %p3431_p2  ;;  %p3438_p9 = por %p3437_p7, %p3436_p5 }
  0x7e   : > { %p3439_p10 = pnand %p3438_p9, %p3432_p3 }
  0x80   : > { %3442 = shalt.err (!%p3439_p10)
}
  0x81   : > { %s4371_s12 = smov 64   ;;  %p3445_p6 = pneg %p3887_p0 }
  0x82   : > { %3178 = dma.hbm_to_vmem [thread:$0]  (!%p3791_p11), %s768_s26, 256, %s770_s0, %s3796_s22, %s4371_s12, %s4371_s12, %s3576_s21  }
  0x83   : > { %s3454_s13 = scalar_lea.vmem %s3877_s23, 128  ;;  %p3462_p3 = scmp.lt.s32.totalorder %s3877_s23, %s3877_s23 }
  0x84   : > { %p3455_p13 = scmp.ne.s32.totalorder %s3877_s23, %s3454_s13  ;;  %p3463_p10 = scmp.lt.s32.totalorder %s3454_s13, %s3454_s13 }
  0x86   : > { %p3457_p1 = pnand %p3455_p13, %p3445_p6  ;;  %p3464_p5 = por %p3463_p10, %p3462_p3 }
  0x88   : > { %p3458_p2 = pneg %p3457_p1 }
  0x8a   : > { %p3465_p7 = pnand %p3464_p5, %p3458_p2 }
  0x8c   : > { %3468 = shalt.err (!%p3465_p7)
}
  0x8d   : > { %s4372_s20 = sld [smem:[#allocation29_spill]] }
  0x8f   : > { %799 = sbr.rel (%p3871_p12) target bundleno = 2493 (0x9bd), region = 100 }
  0x93   : > { %3162 = dma.hbm_to_vmem [thread:$0]  (!%p3887_p0), %s4372_s20, 128, %s3877_s23, [#allocation7]  }
  0x94   : > { %s4373_s22 = sadd.s32 4294967295, %s3567_s29   ;;  %s803_s15 = sand.u32 1, %s3543_s3  }
  0x95   : > { %s801_s21 = sand.u32 1, %s4373_s22   ;;  %s3917_s1 = sshll.u32 %s803_s15, 3 }
  0x96   : > { %s802_s26 = scalar_lea.sflag [#allocation5], %s801_s21 }
  0x97   : > { %3514 = dma.done.wait (%p3860_p8), %s802_s26, 128  }
  0x98   : > { %3516 = vsyncadd (%p3860_p8), %s802_s26, 4294967168 }
  0x99   : > { %3518 = dma.done.wait (%p3851_p4), [#allocation7], 128  }
  0x9a   : > { %3520 = vsyncadd (%p3851_p4), [#allocation7], 4294967168  ;;  %s816_s16 = sand.u32 1, %s3531_s24   ;;  %p4375_p11 = scmp.ne.s32.totalorder %s4367_s25, 0 }
  0x9b   : > { %s2846_s23 = sshll.u32 %s816_s16, 2 }
  0x9c   : > { %s3929_s0 = scalar_lea.vmem [#allocation8], %s2846_s23 }
  0x9d   : > { %4374 = sst [smem:[#allocation26_spill]] %s3929_s0 }
  0x9e   : > { %3522 = dma.done.wait (%p4375_p11), %s802_s26, 640  }
  0x9f   : > { %3524 = vsyncadd (%p4375_p11), %s802_s26, 4294966656  ;;  %s3935_s10 = sshll.u32 %s816_s16, 4  ;;  %p966_p8 = scmp.lt.s32.totalorder %s3551_s27, 1 }
  0xa0   : > { %p1011_p12 = scmp.lt.s32.totalorder %s3555_s28, 1  ;;  %s4376_s12 = sld [smem:[#allocation30_spill]] }
  0xa1   : > { %s3940_s30 = scalar_select %p966_p8, %s3551_s27, 1 }
  0xa2   : > { %s4422_s28 = smov (!%p1011_p12, %s3555_s28), 1  ;;  %s4377_s20 = sld [smem:[#allocation32_spill]] }
  0xa3   : > { %s2921_s25 = sshll.u32 %s3940_s30, 4  ;;  %s2854_s6 = sshll.u32 %s3940_s30, 2 }
  0xa4   : > { %s4378_s5 = sld [smem:[#allocation33_spill]]  ;;  %s2924_s15 = sshll.u32 %s3940_s30, 5 }
  0xa5   : > { %s4380_s7 = sld [smem:[#allocation34_spill]]  ;;  %s4007_s11 = scalar_lea.vmem [#allocation10], %s3935_s10 }
  0xa6   : > { %s3948_s13 = scalar_lea.vmem %s4376_s12, %s2921_s25  ;;  %s4384_s29 = sld [smem:[#allocation40_spill]] }
  0xa7   : > { %s4386_s12 = sld [smem:[#allocation43_spill]]  ;;  %p2860_p4 = scmp.ne.s32.totalorder %s3551_s27, 0 }
  0xa8   : > { %s3953_s22 = scalar_lea.vmem %s4377_s20, %s2921_s25  ;;  %s4387_s4 = sld [smem:[#allocation44_spill]] }
  0xa9   : > { %s4388_s3 = sld [smem:[#allocation45_spill]]  ;;  %s4390_s18 = scalar_lea.vmem (!%p2860_p4), [#allocation4], %s3917_s1 }
  0xaa   : > { %s3958_s26 = scalar_lea.vmem %s4378_s5, %s2854_s6 }
  0xab   : > { %4379 = sst [smem:[#allocation27_spill]] %s3958_s26  ;;  %s3963_s8 = scalar_lea.vmem %s4380_s7, %s2921_s25 }
  0xac   : > { %s3981_s0 = scalar_lea.vmem %s4384_s29, %s2924_s15  ;;  %s4385_s25 = sld [smem:[#allocation41_spill]] }
  0xad   : > { %s1004_s14 = scalar_lea.vmem %s4386_s12, %s3940_s30  ;;  %s2859_s26 = sshll.u32 %s4422_s28, 3 }
  0xae   : > { %s1007_s20 = scalar_lea.vmem %s4387_s4, %s3940_s30  ;;  %s4389_s15 = sld [smem:[#allocation47_spill]] }
  0xaf   : > { %s1010_s21 = scalar_lea.vmem %s4388_s3, %s3940_s30  ;;  %s4004_s7 = scalar_lea.vmem [#allocation9], %s2846_s23 }
  0xb0   : > { %1019 = sbr.rel (%p2860_p4) target bundleno = 185 (0xb9), region = 128 }
  0xb2   : > { %s1001_s16 = scalar_lea.vmem %s4385_s25, %s3940_s30  ;;  %s845_s25 = scalar_lea.vmem [#allocation11], %s3935_s10 }
  0xb4   : > { %s4002_s6 = scalar_lea.vmem %s4389_s15, %s2859_s26 }
  0xb5   : > { %v1020_v1 = vld [vmem:[%s4390_s18] sm:$0xff]  ;;  %v1021_v2 = vld [vmem:[#allocation6] sm:$0xff]  ;;  %vm1023_vm0 = vcmask 261120  }
  0xb6   : > { %v1022_v3 = vadd.f32 %v1021_v2, %v1020_v1 }
  0xb8   : > { %1024 = vst.msk [vmem:[#allocation2] sm:$0xff] %vm1023_vm0, %v1022_v3 }
  0xb9 PF: > { %v1027_v4 = vld [vmem:[%s3948_s13] sm:$0xf]  ;;  %vm1059_vm1 = vcmask 261120   ;;  %v1029_v5 = vld [vmem:[%s3948_s13 + $0x8] sm:$0xf]  ;;  %v3579_v6 = vmov 0.0  }
  0xba   : > { %2981 = vmatprep.subr.bf16.mxu1 %v3579_v6  ;;  %2993 = vmatprep.subr.bf16.mxu0 %v3579_v6  ;;  %v1064_v7 = vsel %vm1059_vm1, %v1027_v4, 0  ;;  %v1150_v8 = vsel %vm1059_vm1, %v1029_v5, 0  ;;  %v1028_v10 = vld [vmem:[%s3948_s13 + $0x4] sm:$0xf]  ;;  %v1235_v11 = vld [vmem:[%s3953_s22] sm:$0xf] }
  0xbb   : > { %2982 = vmatpush3.bf16.xpose.msra.mxu1 %v1064_v7  ;;  %2994 = vmatpush3.bf16.xpose.msra.mxu0 %v1150_v8  ;;  %vm3580_vm2 = vmmov 0   ;;  %v1107_v13 = vsel %vm1059_vm1, %v1028_v10, 0  ;;  %v1268_v14 = vsel %vm1059_vm1, %v1235_v11, 0  ;;  %v1030_v15 = vld [vmem:[%s3948_s13 + $0xc] sm:$0xf]  ;;  %s4391_s28 = sld [smem:[#allocation27_spill]] }
  0xbc   : > { %2983 = vmatprep.mubr.msk.bf16.mxu1 %vm3580_vm2, %v3579_v6  ;;  %2995 = vmatprep.mubr.msk.bf16.mxu0 %vm3580_vm2, %v3579_v6  ;;  %v1237_v16 = vld [vmem:[%s3953_s22 + $0x8] sm:$0xf]  ;;  %v1193_v17 = vsel %vm1059_vm1, %v1030_v15, 0  ;;  %v1236_v19 = vld [vmem:[%s3953_s22 + $0x4] sm:$0xf]  ;;  %s4392_s1 = sld [smem:[#allocation26_spill]] }
  0xbd   : > { %2987 = vmatprep.subr.bf16.mxu1 %v3579_v6  ;;  %3005 = vmatprep.subr.bf16.mxu0 %v3579_v6  ;;  %v1354_v18 = vsel %vm1059_vm1, %v1237_v16, 0  ;;  %v1439_v20 = vld [vmem:[%s3963_s8] sm:$0xf]  ;;  %v1311_v21 = vsel %vm1059_vm1, %v1236_v19, 0  ;;  %v1238_v23 = vld [vmem:[%s3953_s22 + $0xc] sm:$0xf] }
  0xbe   : > { %v1472_v22 = vsel %vm1059_vm1, %v1439_v20, 0  ;;  %v1397_v24 = vsel %vm1059_vm1, %v1238_v23, 0  ;;  %v1441_v25 = vld [vmem:[%s3963_s8 + $0x8] sm:$0xf]  ;;  %v1440_v27 = vld [vmem:[%s3963_s8 + $0x4] sm:$0xf] }
  0xbf   : > { %v4019_v9 = vld [vmem:[#allocation2] sm:$0xff]  ;;  %v1558_v26 = vsel %vm1059_vm1, %v1441_v25, 0  ;;  %v1515_v28 = vsel %vm1059_vm1, %v1440_v27, 0  ;;  %v1442_v29 = vld [vmem:[%s3963_s8 + $0xc] sm:$0xf]  ;;  %vm1655_vm3 = vcmask 64512  }
  0xc0   : > { %v1026_v12 = vpack.c.bf16 %v4019_v9, %v4019_v9  ;;  %v1601_v30 = vsel %vm1059_vm1, %v1442_v29, 0  ;;  %v2877_v11 = vld [vmem:[%s4004_s7] ss:$0 sm:$0xff]  ;;  %vm1895_vm4 = vcmask 1043456   ;;  %s4393_s13 = sld [smem:[#allocation37_spill]]  ;;  %vm2429_vm5 = vcmask 523264  }
  0xc1   : > { %v2869_v39 = vld [vmem:[%s4391_s28] ss:$0 sm:$0xff]  ;;  %v2871_v53 = vld [vmem:[%s4391_s28 + $0x2] ss:$0 sm:$0xff]  ;;  %v2870_v4 = vld [vmem:[%s4391_s28 + $0x1] ss:$0 sm:$0xff] }
  0xc2   : > { %2984 = vmatmul.mubr.msk.bf16.vlgmr.msra.gmra.mxu1 %vm1059_vm1, %v1026_v12  ;;  %2996 = vmatmul.mubr.msk.bf16.vlgmr.msra.gmra.mxu0 %vm1059_vm1, %v1026_v12  ;;  %v2861_v40 = vld [vmem:[%s4392_s1] ss:$0 sm:$0xff]  ;;  %v2863_v55 = vld [vmem:[%s4392_s1 + $0x2] ss:$0 sm:$0xff]  ;;  %v2862_v8 = vld [vmem:[%s4392_s1 + $0x1] ss:$0 sm:$0xff] }
  0xc3   : > { %2988 = vmatpush3.bf16.xpose.msra.mxu1 %v1107_v13  ;;  %3006 = vmatpush3.bf16.xpose.msra.mxu0 %v1268_v14  ;;  %s4395_s9 = sld [smem:[#allocation38_spill]]  ;;  %p2912_p0 = scmp.ne.s32.totalorder %s3551_s27, 1 }
  0xc4   : > { %2989 = vmatprep.mubr.msk.bf16.mxu1 %vm3580_vm2, %v3579_v6  ;;  %3007 = vmatprep.mubr.msk.bf16.mxu0 %vm3580_vm2, %v3579_v6  ;;  %s4397_s4 = sld [smem:[#allocation39_spill]] }
  0xc5   : > { %2999 = vmatprep.subr.bf16.mxu1 %v3579_v6  ;;  %3017 = vmatprep.subr.bf16.mxu0 %v3579_v6  ;;  %s4403_s8 = sld [smem:[#allocation46_spill]] (!%p2912_p0) }
  0xc6   : > { %s4394_s22 = scalar_lea.vmem %s4393_s13, %s3940_s30 }
  0xc9   : > { %s4396_s12 = scalar_lea.vmem %s4395_s9, %s3940_s30 }
  0xca   : > { %2990 = vmatmul.mubr.msk.bf16.vlgmr.msra.gmra.mxu1 %vm1059_vm1, %v1026_v12  ;;  %3008 = vmatmul.mubr.msk.bf16.vlgmr.msra.gmra.mxu0 %vm1059_vm1, %v1026_v12  ;;  %s4398_s2 = scalar_lea.vmem %s4397_s4, %s3940_s30 }
  0xcb   : > { %3000 = vmatpush3.bf16.xpose.msra.mxu1 %v1193_v17  ;;  %3018 = vmatpush3.bf16.xpose.msra.mxu0 %v1354_v18 }
  0xcc   : > { %3001 = vmatprep.mubr.msk.bf16.mxu1 %vm3580_vm2, %v3579_v6  ;;  %3019 = vmatprep.mubr.msk.bf16.mxu0 %vm3580_vm2, %v3579_v6 }
  0xcd   : > { %3011 = vmatprep.subr.bf16.mxu1 %v3579_v6  ;;  %3029 = vmatprep.subr.bf16.mxu0 %v3579_v6 }
  0xd2   : > { %3002 = vmatmul.mubr.msk.bf16.vlgmr.msra.gmra.mxu1 %vm1059_vm1, %v1026_v12  ;;  %3020 = vmatmul.mubr.msk.bf16.vlgmr.msra.gmra.mxu0 %vm1059_vm1, %v1026_v12 }
  0xd3   : > { %3012 = vmatpush3.bf16.xpose.msra.mxu1 %v1311_v21  ;;  %3013 = vmatprep.mubr.msk.bf16.mxu1 %vm3580_vm2, %v3579_v6 }
  0xd4   : > { %3023 = vmatprep.subr.bf16.mxu1 %v3579_v6  ;;  %3030 = vmatpush3.bf16.xpose.msra.mxu0 %v1472_v22 }
  0xd5   : > { %3031 = vmatprep.mubr.msk.bf16.mxu0 %vm3580_vm2, %v3579_v6  ;;  %3041 = vmatprep.subr.bf16.mxu0 %v3579_v6 }
  0xda   : > { %3014 = vmatmul.mubr.msk.bf16.vlgmr.msra.gmra.mxu1 %vm1059_vm1, %v1026_v12 }
  0xdb   : > { %3024 = vmatpush3.bf16.xpose.msra.mxu1 %v1397_v24  ;;  %3025 = vmatprep.mubr.msk.bf16.mxu1 %vm3580_vm2, %v3579_v6  ;;  %v2872_v24 = vld [vmem:[%s4391_s28 + $0x3] ss:$0 sm:$0xff] }
  0xdc   : > { %3032 = vmatmul.mubr.msk.bf16.vlgmr.msra.gmra.mxu0 %vm1059_vm1, %v1026_v12  ;;  %3035 = vmatprep.subr.bf16.mxu1 %v3579_v6 }
  0xdd   : > { %3043 = vmatprep.mubr.msk.bf16.mxu0 %vm3580_vm2, %v3579_v6  ;;  %3042 = vmatpush3.bf16.xpose.msra.mxu0 %v1558_v26 }
  0xde   : > { %3053 = vmatprep.subr.bf16.mxu0 %v3579_v6 }
  0xe2   : > { %3026 = vmatmul.mubr.msk.bf16.vlgmr.msra.gmra.mxu1 %vm1059_vm1, %v1026_v12 }
  0xe3   : > { %3037 = vmatprep.mubr.msk.bf16.mxu1 %vm3580_vm2, %v3579_v6  ;;  %3036 = vmatpush3.bf16.xpose.msra.mxu1 %v1515_v28  ;;  %v2864_v28 = vld [vmem:[%s4392_s1 + $0x3] ss:$0 sm:$0xff] }
  0xe4   : > { %3047 = vmatprep.subr.bf16.mxu1 %v3579_v6  ;;  %3044 = vmatmul.mubr.msk.bf16.vlgmr.msra.gmra.mxu0 %vm1059_vm1, %v1026_v12 }
  0xe5   : > { %3055 = vmatprep.mubr.msk.bf16.mxu0 %vm3580_vm2, %v3579_v6 }
  0xea   : > { %3038 = vmatmul.mubr.msk.bf16.vlgmr.msra.gmra.mxu1 %vm1059_vm1, %v1026_v12 }
  0xeb   : > { %3048 = vmatpush3.bf16.xpose.msra.mxu1 %v1601_v30  ;;  %3049 = vmatprep.mubr.msk.bf16.mxu1 %vm3580_vm2, %v3579_v6 }
  0xec   : > { %3059 = vmatprep.subr.bf16.mxu1 %v3579_v6 }
  0xf2   : > { %3050 = vmatmul.mubr.msk.bf16.vlgmr.msra.gmra.mxu1 %vm1059_vm1, %v1026_v12 }
  0xf3   : > { %3061 = vmatprep.mubr.msk.bf16.mxu1 %vm3580_vm2, %v3579_v6 }
 0x182   : > { %v1100_v31 = vpop.f32.mrf.mxu1  ;;  %v1186_v32 = vpop.f32.mrf.mxu0 }
 0x183   : > { %v1101_v46 = vadd.f32 %v2861_v40, %v1100_v31  ;;  %v1187_v62 = vadd.f32 %v2863_v55, %v1186_v32 }
 0x184   : > { %v2985_v33 = vpop.f32.mrf.mxu1  ;;  %v2997_v34 = vpop.f32.mrf.mxu0 }
 0x185   : > { %v1643_v54 = vmul.f32 0.35355338, %v1101_v46  ;;  %v1645_v7 = vmul.f32 0.35355338, %v1187_v62 }
 0x186   : > { %v1103_v35 = vpop.f32.mrf.mxu1  ;;  %v1189_v36 = vpop.f32.mrf.mxu0 }
 0x187   : > { %v1647_v61 = vpack.c.bf16 %v1643_v54, %v1643_v54  ;;  %v1649_v15 = vpack.c.bf16 %v1645_v7, %v1645_v7 }
 0x188   : > { %v2986_v37 = vpop.f32.mrf.mxu1  ;;  %v2998_v38 = vpop.f32.mrf.mxu0 }
 0x18a   : > { %v1143_v41 = vpop.f32.mrf.mxu1  ;;  %v1304_v42 = vpop.f32.mrf.mxu0 }
 0x18b   : > { %v1305_v43 = vadd.f32 %v2869_v39, %v1304_v42  ;;  %v1144_v16 = vadd.f32 %v2862_v8, %v1143_v41  ;;  %v2878_v42 = vld [vmem:[%s4004_s7 + $0x1] ss:$0 sm:$0xff] }
 0x18c   : > { %v2991_v44 = vpop.f32.mrf.mxu1  ;;  %v3009_v45 = vpop.f32.mrf.mxu0 }
 0x18d   : > { %v1651_v47 = vpack.c.bf16 %v1305_v43, %v1305_v43  ;;  %v1644_v26 = vmul.f32 0.35355338, %v1144_v16 }
 0x18e   : > { %v1146_v48 = vpop.f32.mrf.mxu1  ;;  %v1307_v49 = vpop.f32.mrf.mxu0 }
 0x18f   : > { %v1660_v50 = vsel %vm1655_vm3, %v1651_v47, 0  ;;  %v1648_v33 = vpack.c.bf16 %v1644_v26, %v1644_v26 }
 0x190   : > { %v2992_v51 = vpop.f32.mrf.mxu1  ;;  %v3010_v52 = vpop.f32.mrf.mxu0  ;;  %3054 = vmatpush3.bf16.xpose.msra.mxu0 %v1660_v50 }
 0x191   : > { %3065 = vmatprep.subr.bf16.mxu0 %v3579_v6 }
 0x192   : > { %v1229_v56 = vpop.f32.mrf.mxu1  ;;  %v1390_v57 = vpop.f32.mrf.mxu0 }
 0x193   : > { %v1391_v58 = vadd.f32 %v2871_v53, %v1390_v57  ;;  %v1230_v34 = vadd.f32 %v2864_v28, %v1229_v56 }
 0x194   : > { %v3003_v59 = vpop.f32.mrf.mxu1  ;;  %v3021_v60 = vpop.f32.mrf.mxu0 }
 0x195   : > { %v1653_v63 = vpack.c.bf16 %v1391_v58, %v1391_v58  ;;  %v1646_v39 = vmul.f32 0.35355338, %v1230_v34 }
 0x196   : > { %v1232_v0 = vpop.f32.mrf.mxu1  ;;  %v1393_v1 = vpop.f32.mrf.mxu0 }
 0x197   : > { %v1752_v2 = vsel %vm1655_vm3, %v1653_v63, 0  ;;  %3056 = vmatmul.mubr.msk.bf16.vlgmr.msra.gmra.mxu0 %vm1655_vm3, %v1647_v61  ;;  %v1650_v40 = vpack.c.bf16 %v1646_v39, %v1646_v39 }
 0x198   : > { %v3004_v3 = vpop.f32.mrf.mxu1  ;;  %3066 = vmatpush3.bf16.xpose.msra.mxu0 %v1752_v2  ;;  %v3022_v5 = vpop.f32.mrf.mxu0  ;;  %3067 = vmatprep.mubr.msk.bf16.mxu0 %vm3580_vm2, %v3579_v6 }
 0x199   : > { %3077 = vmatprep.subr.bf16.mxu0 %v3579_v6 }
 0x19a   : > { %v1347_v10 = vpop.f32.mrf.mxu1 }
 0x19b   : > { %v1348_v12 = vadd.f32 %v2870_v4, %v1347_v10 }
 0x19c   : > { %v3015_v13 = vpop.f32.mrf.mxu1  ;;  %v1508_v14 = vpop.f32.mrf.mxu0 }
 0x19d   : > { %v1652_v17 = vpack.c.bf16 %v1348_v12, %v1348_v12  ;;  %v1509_v18 = vadd.f32 %v2877_v11, %v1508_v14 }
 0x19e   : > { %v1350_v19 = vpop.f32.mrf.mxu1  ;;  %v3033_v20 = vpop.f32.mrf.mxu0 }
 0x19f   : > { %v1706_v21 = vsel %vm1655_vm3, %v1652_v17, 0  ;;  %3068 = vmatmul.mubr.msk.bf16.vlgmr.msra.gmra.mxu0 %vm1655_vm3, %v1649_v15  ;;  %v1888_v22 = vpack.c.bf16 %v1509_v18, %v1509_v18 }
 0x1a0   : > { %v3016_v23 = vpop.f32.mrf.mxu1  ;;  %3060 = vmatpush3.bf16.xpose.msra.mxu1 %v1706_v21  ;;  %v1511_v25 = vpop.f32.mrf.mxu0  ;;  %3079 = vmatprep.mubr.msk.bf16.mxu0 %vm3580_vm2, %v3579_v6 }
 0x1a1   : > { %3071 = vmatprep.subr.bf16.mxu1 %v3579_v6  ;;  %v1897_v27 = vsel %vm1895_vm4, %v1888_v22, 0 }
 0x1a2   : > { %v1433_v29 = vpop.f32.mrf.mxu1  ;;  %v3034_v30 = vpop.f32.mrf.mxu0  ;;  %3078 = vmatpush3.bf16.msra.mxu0 %v1897_v27 }
 0x1a3   : > { %v1434_v31 = vadd.f32 %v2872_v24, %v1433_v29  ;;  %3089 = vmatprep.subr.bf16.mxu0 %v3579_v6 }
 0x1a4   : > { %v3027_v32 = vpop.f32.mrf.mxu1  ;;  %v4126_v41 = vpop.f32.mrf.mxu0 }
 0x1a5   : > { %v1654_v35 = vpack.c.bf16 %v1434_v31, %v1434_v31 }
 0x1a6   : > { %v1436_v36 = vpop.f32.mrf.mxu1  ;;  %v3045_v43 = vpop.f32.mrf.mxu0 }
 0x1a7   : > { %v1798_v37 = vsel %vm1655_vm3, %v1654_v35, 0  ;;  %3062 = vmatmul.mubr.msk.bf16.vlgmr.msra.gmra.mxu1 %vm1655_vm3, %v1648_v33  ;;  %v2879_v36 = vld [vmem:[%s4004_s7 + $0x2] ss:$0 sm:$0xff] }
 0x1a8   : > { %v3028_v38 = vpop.f32.mrf.mxu1  ;;  %3072 = vmatpush3.bf16.xpose.msra.mxu1 %v1798_v37  ;;  %3073 = vmatprep.mubr.msk.bf16.mxu1 %vm3580_vm2, %v3579_v6  ;;  %v1597_v46 = vpop.f32.mrf.mxu0 }
 0x1a9   : > { %3083 = vmatprep.subr.bf16.mxu1 %v3579_v6  ;;  %v1595_v38 = vadd.f32 %v2879_v36, %v4126_v41 }
 0x1aa   : > { %v1551_v44 = vpop.f32.mrf.mxu1  ;;  %v3046_v49 = vpop.f32.mrf.mxu0 }
 0x1ab   : > { %v1552_v45 = vadd.f32 %v2878_v42, %v1551_v44 }
 0x1ac   : > { %v3039_v47 = vpop.f32.mrf.mxu1 }
 0x1ad   : > { %v1889_v48 = vpack.c.bf16 %v1552_v45, %v1552_v45 }
 0x1ae   : > { %v1554_v50 = vpop.f32.mrf.mxu1 }
 0x1af   : > { %3074 = vmatmul.mubr.msk.bf16.vlgmr.msra.gmra.mxu1 %vm1655_vm3, %v1650_v40  ;;  %v1943_v51 = vsel %vm1895_vm4, %v1889_v48, 0  ;;  %v1890_v40 = vpack.c.bf16 %v1595_v38, %v1595_v38  ;;  %v2880_v48 = vld [vmem:[%s4004_s7 + $0x3] ss:$0 sm:$0xff] }
 0x1b0   : > { %3085 = vmatprep.mubr.msk.bf16.mxu1 %vm3580_vm2, %v3579_v6  ;;  %v3040_v52 = vpop.f32.mrf.mxu1  ;;  %3084 = vmatpush3.bf16.msra.mxu1 %v1943_v51 }
 0x1b1   : > { %3095 = vmatprep.subr.bf16.mxu1 %v3579_v6  ;;  %v1989_v45 = vsel %vm1895_vm4, %v1890_v40, 0 }
 0x1b2   : > { %v4131_v53 = vpop.f32.mrf.mxu1 }
 0x1b3   : > { %v1638_v50 = vadd.f32 %v2880_v48, %v4131_v53 }
 0x1b4   : > { %v3051_v54 = vpop.f32.mrf.mxu1 }
 0x1b5   : > { %v1891_v52 = vpack.c.bf16 %v1638_v50, %v1638_v50 }
 0x1b6   : > { %v1640_v55 = vpop.f32.mrf.mxu1 }
 0x1b8   : > { %v3052_v56 = vpop.f32.mrf.mxu1 }
 0x1b9   : > { %v2035_v56 = vsel %vm1895_vm4, %v1891_v52, 0  ;;  %v3277_v52 = vld [vmem:[%s3981_s0 + $0x18] sm:$0xff]  }
 0x257   : > { %v1696_v57 = vpop.f32.mrf.mxu0 }
 0x258   : > { %v1840_v58 = vsel %vm1655_vm3, %v1696_v57, -inf }
 0x259   : > { %1841 = vmax.xlane.f32.xlu0 %v1840_v58  ;;  %v3057_v59 = vpop.f32.mrf.mxu0 }
 0x25a   : > { %v2081_v59 = vld [vmem:[%s4007_s11] sm:$0xf] }
 0x25b   : > { %v1699_v60 = vpop.f32.mrf.mxu0 }
 0x25c   : > { %v2089_v60 = vsel %vm1895_vm4, %v2081_v59, 0 }
 0x25d   : > { %v3058_v61 = vpop.f32.mrf.mxu0 }
 0x25e   : > { %v2082_v61 = vld [vmem:[%s4007_s11 + $0x4] sm:$0xf] }
 0x25f   : > { %v1788_v62 = vpop.f32.mrf.mxu0 }
 0x260   : > { %v1846_v63 = vsel %vm1655_vm3, %v1788_v62, -inf }
 0x261   : > { %1847 = vmax.xlane.f32.xlu1 %v1846_v63  ;;  %v3069_v0 = vpop.f32.mrf.mxu0  ;;  %v2083_v63 = vld [vmem:[%s4007_s11 + $0x8] sm:$0xf] }
 0x263   : > { %v1791_v1 = vpop.f32.mrf.mxu0 }
 0x265   : > { %v3070_v2 = vpop.f32.mrf.mxu0 }
 0x266   : > { %v2181_v2 = vsel %vm1895_vm4, %v2083_v63, 0 }
 0x267   : > { %v1742_v3 = vpop.f32.mrf.mxu1 }
 0x268   : > { %v1843_v4 = vsel %vm1655_vm3, %v1742_v3, -inf }
 0x269   : > { %1844 = vmax.xlane.f32.xlu0 %v1843_v4  ;;  %v3063_v5 = vpop.f32.mrf.mxu1 }
 0x26b   : > { %v1745_v7 = vpop.f32.mrf.mxu1 }
 0x26d   : > { %v3064_v8 = vpop.f32.mrf.mxu1 }
 0x26f   : > { %v1834_v10 = vpop.f32.mrf.mxu1 }
 0x270   : > { %v1849_v11 = vsel %vm1655_vm3, %v1834_v10, -inf }
 0x271   : > { %1850 = vmax.xlane.f32.xlu1 %v1849_v11  ;;  %v3075_v12 = vpop.f32.mrf.mxu1 }
 0x273   : > { %v1837_v13 = vpop.f32.mrf.mxu1 }
 0x274   : > { %v2084_v13 = vld [vmem:[%s4007_s11 + $0xc] sm:$0xf] }
 0x275   : > { %v3076_v14 = vpop.f32.mrf.mxu1 }
 0x2e2   : > { %v1842_v15 = vpop.xlane.xlu0 %1841 }
 0x2e3   : > { %v1852_v16 = vsub.f32 %v1696_v57, %v1842_v15 }
 0x2e5   : > { %v1856_v17 = vmul.f32 1.442695, %v1852_v16  ;;  %v2227_v16 = vsel %vm1895_vm4, %v2084_v13, 0  ;;  %v3282_v13 = vld [vmem:[%s845_s25] sm:$0xff]  }
 0x2e7   : > { %3283 = vpow2.f32 %v1856_v17 }
 0x2ea   : > { %v1848_v18 = vpop.xlane.xlu1 %1847 }
 0x2eb   : > { %v1854_v19 = vsub.f32 %v1788_v62, %v1848_v18  ;;  %v2135_v62 = vsel %vm1895_vm4, %v2082_v61, 0 }
 0x2ed   : > { %v1860_v20 = vmul.f32 1.442695, %v1854_v19 }
 0x2ef   : > { %3285 = vpow2.f32 %v1860_v20 }
 0x2f2   : > { %v1845_v21 = vpop.xlane.xlu0 %1844 }
 0x2f3   : > { %v1853_v22 = vsub.f32 %v1742_v3, %v1845_v21 }
 0x2f4   : > { %v3284_v23 = vpop.eup %3283 }
 0x2f5   : > { %v1858_v24 = vmul.f32 1.442695, %v1853_v22  ;;  %v1864_v25 = vsel %vm1655_vm3, %v3284_v23, 0.0 }
 0x2f6   : > { %1865 = vadd.xlane.f32.xlu0 %v1864_v25 }
 0x2f7   : > { %3287 = vpow2.f32 %v1858_v24 }
 0x2fa   : > { %v1851_v26 = vpop.xlane.xlu1 %1850 }
 0x2fb   : > { %v1855_v27 = vsub.f32 %v1834_v10, %v1851_v26 }
 0x2fc   : > { %v3286_v28 = vpop.eup %3285 }
 0x2fd   : > { %v1862_v29 = vmul.f32 1.442695, %v1855_v27  ;;  %v1870_v30 = vsel %vm1655_vm3, %v3286_v28, 0.0 }
 0x2fe   : > { %1871 = vadd.xlane.f32.xlu0 %v1870_v30 }
 0x2ff   : > { %3289 = vpow2.f32 %v1862_v29 }
 0x304   : > { %v3288_v31 = vpop.eup %3287 }
 0x305   : > { %v1867_v32 = vsel %vm1655_vm3, %v3288_v31, 0.0 }
 0x306   : > { %1868 = vadd.xlane.f32.xlu1 %v1867_v32 }
 0x30c   : > { %v3290_v33 = vpop.eup %3289 }
 0x30d   : > { %v1873_v34 = vsel %vm1655_vm3, %v3290_v33, 0.0 }
 0x30e   : > { %1874 = vadd.xlane.f32.xlu1 %v1873_v34 }
 0x37f   : > { %v1866_v35 = vpop.xlane.xlu0 %1865 }
 0x380   : > { %3291 = vrcp.f32 %v1866_v35 }
 0x387   : > { %v1872_v37 = vpop.xlane.xlu0 %1871 }
 0x388   : > { %3293 = vrcp.f32 %v1872_v37 }
 0x38d   : > { %v3292_v39 = vpop.eup %3291 }
 0x38e   : > { %v1880_v42 = vmul.f32 %v3292_v39, %v3284_v23 }
 0x38f   : > { %v1869_v43 = vpop.xlane.xlu1 %1868 }
 0x390   : > { %3295 = vrcp.f32 %v1869_v43  ;;  %v1884_v44 = vpack.c.bf16 %v1880_v42, %v1880_v42 }
 0x392   : > { %3080 = vmatmul.mubr.msk.bf16.vlgmr.msra.gmra.mxu0 %vm1655_vm3, %v1884_v44 }
 0x393   : > { %3090 = vmatpush3.bf16.msra.mxu0 %v1989_v45  ;;  %3091 = vmatprep.mubr.msk.bf16.mxu0 %vm3580_vm2, %v3579_v6  ;;  %v2897_v45 = vld [vmem:[%s4394_s22] ss:$0 sm:$0xff] }
 0x394   : > { %3101 = vmatprep.subr.bf16.mxu0 %v3579_v6 }
 0x395   : > { %v3294_v46 = vpop.eup %3293 }
 0x396   : > { %v1882_v47 = vmul.f32 %v3294_v46, %v3286_v28 }
 0x397   : > { %v1875_v41 = vpop.xlane.xlu1 %1874 }
 0x398   : > { %3297 = vrcp.f32 %v1875_v41  ;;  %v1886_v49 = vpack.c.bf16 %v1882_v47, %v1882_v47 }
 0x39a   : > { %3092 = vmatmul.mubr.msk.bf16.vlgmr.msra.gmra.mxu0 %vm1655_vm3, %v1886_v49 }
 0x39b   : > { %3103 = vmatprep.mubr.msk.bf16.mxu0 %vm3580_vm2, %v3579_v6  ;;  %3102 = vmatpush3.bf16.msra.mxu0 %v2089_v60  ;;  %v3279_v60 = vld [vmem:[%s3981_s0 + $0x8] sm:$0xff]  }
 0x39c   : > { %3113 = vmatprep.subr.bf16.mxu0 %v3579_v6  ;;  %v2358_v61 = vsel %vm1059_vm1, %v3279_v60, 0 }
 0x39d   : > { %v3296_v51 = vpop.eup %3295 }
 0x39e   : > { %v1881_v54 = vmul.f32 %v3296_v51, %v3288_v31 }
 0x3a0   : > { %v1885_v55 = vpack.c.bf16 %v1881_v54, %v1881_v54  ;;  %v2364_v54 = vsel %vm1059_vm1, %v3277_v52, 0 }
 0x3a2   : > { %3086 = vmatmul.mubr.msk.bf16.vlgmr.msra.gmra.mxu1 %vm1655_vm3, %v1885_v55 }
 0x3a3   : > { %3096 = vmatpush3.bf16.msra.mxu1 %v2035_v56  ;;  %3097 = vmatprep.mubr.msk.bf16.mxu1 %vm3580_vm2, %v3579_v6 }
 0x3a4   : > { %3107 = vmatprep.subr.bf16.mxu1 %v3579_v6 }
 0x3a5   : > { %v3298_v53 = vpop.eup %3297 }
 0x3a6   : > { %v1883_v57 = vmul.f32 %v3298_v53, %v3290_v33 }
 0x3a8   : > { %v1887_v58 = vpack.c.bf16 %v1883_v57, %v1883_v57 }
 0x3aa   : > { %3098 = vmatmul.mubr.msk.bf16.vlgmr.msra.gmra.mxu1 %vm1655_vm3, %v1887_v58 }
 0x3ab   : > { %3109 = vmatprep.mubr.msk.bf16.mxu1 %vm3580_vm2, %v3579_v6  ;;  %3108 = vmatpush3.bf16.msra.mxu1 %v2135_v62  ;;  %v3280_v62 = vld [vmem:[%s3981_s0] sm:$0xff]  }
 0x3ac   : > { %3119 = vmatprep.subr.bf16.mxu1 %v3579_v6  ;;  %v2355_v63 = vsel %vm1059_vm1, %v3280_v62, 0 }
 0x452   : > { %v1933_v0 = vpop.f32.mrf.mxu0 }
 0x453   : > { %v2077_v1 = vpack.c.bf16 %v1933_v0, %v1933_v0  ;;  %v3281_v0 = vld [vmem:[%s845_s25 + $0x8] sm:$0xff]  }
 0x454   : > { %v3081_v3 = vpop.f32.mrf.mxu0 }
 0x455   : > { %3104 = vmatmul.mubr.msk.bf16.vlgmr.msra.gmra.mxu0 %vm1655_vm3, %v2077_v1  ;;  %v2437_v1 = vsel %vm2429_vm5, %v3281_v0, 0 }
 0x456   : > { %v1936_v4 = vpop.f32.mrf.mxu0  ;;  %3114 = vmatpush3.bf16.msra.mxu0 %v2181_v2  ;;  %3115 = vmatprep.mubr.msk.bf16.mxu0 %vm3580_vm2, %v3579_v6 }
 0x457   : > { %3125 = vmatprep.subr.bf16.mxu0 %v3579_v6 }
 0x458   : > { %v3082_v5 = vpop.f32.mrf.mxu0 }
 0x45a   : > { %v2025_v7 = vpop.f32.mrf.mxu0 }
 0x45b   : > { %v2079_v8 = vpack.c.bf16 %v2025_v7, %v2025_v7  ;;  %v2898_v7 = vld [vmem:[%s4396_s12] ss:$0 sm:$0xff] }
 0x45c   : > { %v3093_v10 = vpop.f32.mrf.mxu0 }
 0x45d   : > { %3116 = vmatmul.mubr.msk.bf16.vlgmr.msra.gmra.mxu0 %vm1655_vm3, %v2079_v8  ;;  %v2899_v10 = vld [vmem:[%s4398_s2] ss:$0 sm:$0xff] }
 0x45e   : > { %v2028_v11 = vpop.f32.mrf.mxu0  ;;  %3133 = vmatprep.mubr.msk.bf16.mxu0 %vm3580_vm2, %v3579_v6  ;;  %3126 = vmatpush3.bf16.xpose.msra.mxu0 %v2364_v54 }
 0x45f   : > { %3127 = vmatprep.subr.bf16.mxu0 %v3579_v6 }
 0x460   : > { %v3094_v12 = vpop.f32.mrf.mxu0 }
 0x462   : > { %v1979_v14 = vpop.f32.mrf.mxu1 }
 0x463   : > { %v2078_v15 = vpack.c.bf16 %v1979_v14, %v1979_v14  ;;  %v2434_v14 = vsel %vm2429_vm5, %v3282_v13, 0 }
 0x464   : > { %v3087_v17 = vpop.f32.mrf.mxu1 }
 0x465   : > { %3110 = vmatmul.mubr.msk.bf16.vlgmr.msra.gmra.mxu1 %vm1655_vm3, %v2078_v15  ;;  %v2900_v15 = vld [vmem:[%s1001_s16] ss:$0 sm:$0xff] }
 0x466   : > { %v1982_v18 = vpop.f32.mrf.mxu1  ;;  %3120 = vmatpush3.bf16.msra.mxu1 %v2227_v16  ;;  %3121 = vmatprep.mubr.msk.bf16.mxu1 %vm3580_vm2, %v3579_v6 }
 0x467   : > { %3137 = vmatprep.subr.bf16.mxu1 %v3579_v6 }
 0x468   : > { %v3088_v19 = vpop.f32.mrf.mxu1 }
 0x46a   : > { %v2071_v20 = vpop.f32.mrf.mxu1 }
 0x46b   : > { %v2080_v21 = vpack.c.bf16 %v2071_v20, %v2071_v20 }
 0x46c   : > { %v3099_v22 = vpop.f32.mrf.mxu1 }
 0x46d   : > { %3122 = vmatmul.mubr.msk.bf16.vlgmr.msra.gmra.mxu1 %vm1655_vm3, %v2080_v21 }
 0x46e   : > { %v2074_v23 = vpop.f32.mrf.mxu1  ;;  %3141 = vmatprep.mubr.msk.bf16.mxu1 %vm3580_vm2, %v3579_v6  ;;  %3138 = vmatpush3.bf16.xpose.msra.mxu1 %v2437_v1 }
 0x46f   : > { %3139 = vmatprep.subr.bf16.mxu1 %v3579_v6  ;;  %v2906_v23 = vld [vmem:[%s1004_s14] ss:$0 sm:$0xff] }
 0x470   : > { %v3100_v24 = vpop.f32.mrf.mxu1 }
 0x476   : > { %3140 = vmatpush3.bf16.xpose.msra.mxu1 %v2434_v14 }
 0x515   : > { %v2125_v25 = vpop.f32.mrf.mxu0 }
 0x516   : > { %v2269_v36 = vsel %vm1059_vm1, %v2125_v25, 0.0 }
 0x517   : > { %v3105_v26 = vpop.f32.mrf.mxu0 }
 0x519   : > { %v2128_v27 = vpop.f32.mrf.mxu0 }
 0x51b   : > { %v3106_v28 = vpop.f32.mrf.mxu0 }
 0x51d   : > { %v2217_v29 = vpop.f32.mrf.mxu0 }
 0x51e   : > { %v2272_v40 = vsel %vm1059_vm1, %v2217_v29, 0.0 }
 0x51f   : > { %v3117_v30 = vpop.f32.mrf.mxu0 }
 0x521   : > { %v2220_v31 = vpop.f32.mrf.mxu0 }
 0x523   : > { %v3118_v32 = vpop.f32.mrf.mxu0 }
 0x525   : > { %v2171_v33 = vpop.f32.mrf.mxu1 }
 0x526   : > { %v2270_v34 = vsel %vm1059_vm1, %v2171_v33, 0.0 }
 0x527   : > { %v3111_v35 = vpop.f32.mrf.mxu1  ;;  %v2271_v37 = vadd.f32 %v2270_v34, %v2269_v36 }
 0x529   : > { %v2174_v38 = vpop.f32.mrf.mxu1  ;;  %v2273_v43 = vadd.f32 %v2272_v40, %v2271_v37  ;;  %v2910_v40 = vld [vmem:[%s1007_s20] ss:$0 sm:$0xff] }
 0x52b   : > { %v3112_v39 = vpop.f32.mrf.mxu1 }
 0x52d   : > { %v2263_v42 = vpop.f32.mrf.mxu1 }
 0x52e   : > { %v2274_v44 = vsel %vm1059_vm1, %v2263_v42, 0.0 }
 0x52f   : > { %v2275_v46 = vadd.f32 %v2274_v44, %v2273_v43  ;;  %v3123_v47 = vpop.f32.mrf.mxu1  ;;  %v2911_v43 = vld [vmem:[%s1010_s21] ss:$0 sm:$0xff] }
 0x531   : > { %v2283_v48 = vadd.f32 %v2897_v45, %v2275_v46  ;;  %v2266_v41 = vpop.f32.mrf.mxu1 }
 0x533   : > { %v3124_v49 = vpop.f32.mrf.mxu1  ;;  %v2284_v50 = vadd.f32 %v2283_v48, %v4019_v9  ;;  %v3278_v9 = vld [vmem:[%s3981_s0 + $0x10] sm:$0xff]  }
 0x534   : > { %v2361_v59 = vsel %vm1059_vm1, %v3278_v9, 0 }
 0x535   : > { %v2287_v51 = vsel %vm1059_vm1, %v2284_v50, 0.0  ;;  %3128 = vmatpush3.bf16.xpose.msra.mxu0 %v2361_v59 }
 0x536   : > { %2288 = vadd.xlane.f32.xlu0 %v2287_v51  ;;  %3129 = vmatprep.subr.bf16.mxu0 %v3579_v6 }
 0x53d   : > { %3130 = vmatpush3.bf16.xpose.msra.mxu0 %v2358_v61 }
 0x53e   : > { %3131 = vmatprep.subr.bf16.mxu0 %v3579_v6 }
 0x545   : > { %3132 = vmatpush3.bf16.xpose.msra.mxu0 %v2355_v63 }
 0x5bf   : > { %v2289_v55 = vpop.xlane.xlu0 %2288 }
 0x5c0   : > { %v2291_v56 = vmul.f32 0.03125, %v2289_v55 }
 0x5c2   : > { %v2292_v53 = vsub.f32 %v2284_v50, %v2291_v56 }
 0x5c4   : > { %v2293_v57 = vmul.f32 %v2292_v53, %v2292_v53 }
 0x5c6   : > { %v2294_v58 = vsel %vm1059_vm1, %v2293_v57, 0.0 }
 0x5c7   : > { %2295 = vadd.xlane.f32.xlu1 %v2294_v58 }
 0x650   : > { %v2296_v2 = vpop.xlane.xlu1 %2295 }
 0x651   : > { %v2297_v3 = vmul.f32 0.03125, %v2296_v2 }
 0x653   : > { %v2298_v4 = vadd.f32 1e-05, %v2297_v3 }
 0x655   : > { %3299 = vrsqrt.f32 %v2298_v4 }
 0x662   : > { %v3300_v5 = vpop.eup %3299 }
 0x663   : > { %v2300_v8 = vmul.f32 %v3300_v5, %v2292_v53 }
 0x665   : > { %v2307_v11 = vmul.f32 %v2898_v7, %v2300_v8 }
 0x667   : > { %v2314_v6 = vadd.f32 %v2899_v10, %v2307_v11 }
 0x669   : > { %v2315_v12 = vpack.c.bf16 %v2314_v6, %v2314_v6 }
 0x66b   : > { %3134 = vmatmul.mubr.msk.bf16.vlgmr.msra.gmra.mxu0 %vm1059_vm1, %v2315_v12 }
 0x72b   : > { %v2400_v16 = vpop.f32.mrf.mxu0 }
 0x72c   : > { %v2401_v17 = vadd.f32 %v2900_v15, %v2400_v16 }
 0x72d   : > { %v3135_v18 = vpop.f32.mrf.mxu0 }
 0x72e   : > { %v2406_v19 = vmax.f32 %v2401_v17, 0.0 }
 0x72f   : > { %v2403_v20 = vpop.f32.mrf.mxu0 }
 0x730   : > { %v2407_v21 = vpack.c.bf16 %v2406_v19, %v2406_v19 }
 0x731   : > { %v3136_v22 = vpop.f32.mrf.mxu0 }
 0x732   : > { %3142 = vmatmul.mubr.msk.bf16.vlgmr.msra.gmra.mxu1 %vm2429_vm5, %v2407_v21 }
 0x7f2   : > { %v2473_v24 = vpop.f32.mrf.mxu1 }
 0x7f3   : > { %v2474_v25 = vadd.f32 %v2906_v23, %v2473_v24 }
 0x7f4   : > { %v3143_v26 = vpop.f32.mrf.mxu1 }
 0x7f5   : > { %v2479_v27 = vadd.f32 %v2474_v25, %v2314_v6 }
 0x7f6   : > { %v2476_v28 = vpop.f32.mrf.mxu1 }
 0x7f7   : > { %v2482_v29 = vsel %vm1059_vm1, %v2479_v27, 0.0 }
 0x7f8   : > { %2483 = vadd.xlane.f32.xlu0 %v2482_v29  ;;  %v3144_v30 = vpop.f32.mrf.mxu1 }
 0x881   : > { %v2484_v31 = vpop.xlane.xlu0 %2483 }
 0x882   : > { %v2485_v32 = vmul.f32 0.03125, %v2484_v31 }
 0x884   : > { %v2486_v33 = vsub.f32 %v2479_v27, %v2485_v32 }
 0x886   : > { %v2487_v34 = vmul.f32 %v2486_v33, %v2486_v33 }
 0x888   : > { %v2488_v35 = vsel %vm1059_vm1, %v2487_v34, 0.0 }
 0x889   : > { %2489 = vadd.xlane.f32.xlu1 %v2488_v35 }
 0x912   : > { %v2490_v36 = vpop.xlane.xlu1 %2489 }
 0x913   : > { %v2491_v37 = vmul.f32 0.03125, %v2490_v36 }
 0x915   : > { %v2492_v38 = vadd.f32 1e-05, %v2491_v37 }
 0x917   : > { %3301 = vrsqrt.f32 %v2492_v38 }
 0x924   : > { %v3302_v39 = vpop.eup %3301 }
 0x925   : > { %v2494_v42 = vmul.f32 %v3302_v39, %v2486_v33 }
 0x927   : > { %v2501_v44 = vmul.f32 %v2910_v40, %v2494_v42  ;;  %2513 = sbr.rel (%p2912_p0) target bundleno = 2493 (0x9bd), region = 132 }
 0x929   : > { %v2508_v45 = vadd.f32 %v2911_v43, %v2501_v44 }
 0x92b   : > { %2509 = vst.msk [vmem:[#allocation2] sm:$0xff] %vm1059_vm1, %v2508_v45 }
 0x92c   : > { %v2913_v46 = vld [vmem:[%s4403_s8] ss:$0 sm:$0xff]  ;;  %v2914_v41 = vld [vmem:[#allocation3] ss:$0 sm:$0xff]  ;;  %vm2533_vm6 = vcmask 7168  }
 0x92d   : > { %v2521_v47 = vmul.f32 %v2913_v46, %v2508_v45 }
 0x92f   : > { %v2522_v48 = vsel %vm1059_vm1, %v2521_v47, 0.0 }
 0x930   : > { %2523 = vadd.xlane.f32.xlu0 %v2522_v48 }
 0x9b9   : > { %v2524_v49 = vpop.xlane.xlu0 %2523 }
 0x9ba   : > { %v2532_v50 = vadd.f32 %v2914_v41, %v2524_v49 }
 0x9bc   : > { %2534 = vst.msk [vmem:[%s4002_s6] sm:$0xff] %vm2533_vm6, %v2532_v50 }
 0x9bd PF: > { %s4404_s30 = sld [smem:[#allocation21_spill]] }
 0x9be   : > { %s4405_s23 = sld [smem:[#allocation15_spill]] }
 0x9bf   : > { %s4406_s24 = sld [smem:[#allocation16_spill]] }
 0x9c0   : > { %s4407_s2 = sld [smem:[#allocation24_spill]] }
 0x9c1   : > { %s4408_s25 = sld [smem:[#allocation17_spill]] }
 0x9c2   : > { %s4409_s3 = sld [smem:[#allocation18_spill]] }
 0x9c3   : > { %s36_s29 = sadd.s32 1, %s4404_s30   ;;  %s4410_s26 = sld [smem:[#allocation25_spill]] }
 0x9c4   : > { %p33_p9 = scmp.ge.s32.totalorder %s36_s29, 6   ;;  %s4411_s27 = sld [smem:[#allocation19_spill]] }
 0x9c5   : > { %s4412_s28 = sld [smem:[#allocation20_spill]] }
 0x9c6   : > { %s4413_s19 = sld [smem:[#allocation22_spill]]  ;;  %35 = sbr.rel (!%p33_p9) target bundleno = 29 (0x1d), region = 232 }
 0x9c7   : > { %s4414_s4 = sld [smem:[#allocation23_spill]] }
 0x9cb   :  { %2554 = vsyncpa [#allocation5], 1 }
 0x9cc   :  { %2556 = vsyncpa [#allocation5 + $0x1], 1 }
 0x9cd   :  { %2557 = vsyncpa [#allocation7], 1 }

</bundles_post_ra>
